<compile_context>
chip_gen: v7x
topology: tpu7x:2x2x1
jax: 0.10.0
libtpu: 0.0.40
codegen_flags: <defaults>
</compile_context>

<pallas_src>
import functools

import jax
import jax.numpy as jnp
import numpy as np
from jax.experimental import pallas as pl
from jax.experimental.pallas import tpu as pltpu


def _gaussian_1d(window_size: int, sigma: float) -> np.ndarray:
    """Same construction as SSIM.create_window's normalized 1D gaussian."""
    x = np.arange(window_size, dtype=np.float64)
    g = np.exp(-((x - window_size // 2) ** 2) / (2.0 * sigma ** 2))
    return (g / g.sum()).astype(np.float32)


def _band_matrix(n: int, g1d: np.ndarray) -> np.ndarray:
    """Banded matrix M with M[i, k] = g[k - i + pad] (zero-padded 1D conv).

    The gaussian is symmetric about its center (odd window), so M is symmetric
    and the same matrix works for both the left- (H pass) and right- (W pass)
    multiplication.
    """
    ws = g1d.shape[0]
    pad = ws // 2
    m = np.zeros((n, n), dtype=np.float32)
    for i in range(n):
        for k in range(max(0, i - pad), min(n, i + pad + 1)):
            m[i, k] = g1d[k - i + pad]
    return m


def _combined_loss_kernel(a_h_ref, a_w_ref, x1_ref, x2_ref,
                          ssim_out_ref, sq_out_ref, *, G, H, W):
    """One grid step = G flattened (batch*channel) images of shape (H, W)."""
    x1 = x1_ref[...].astype(jnp.float32)          # (G, H, W)
    x2 = x2_ref[...].astype(jnp.float32)

    # The five depthwise-conv operands stacked along the leading / M axis.
    s3 = jnp.concatenate([x1, x2, x1 * x1, x2 * x2, x1 * x2], axis=0)  # (5G,H,W)

    # W-direction gaussian pass (lane axis): one MXU matmul against the
    # symmetric banded matrix (handles the zero padding implicitly).
    t = jnp.dot(s3.reshape(5 * G * H, W), a_w_ref[...],
                preferred_element_type=jnp.float32).reshape(5 * G, H, W)

    # H-direction gaussian pass (sublane axis): batched MXU matmul.
    a_hb = jnp.broadcast_to(a_h_ref[...], (5 * G, H, H))
    u = jnp.einsum('bik,bkw->biw', a_hb, t,
                   preferred_element_type=jnp.float32)   # (5G, H, W)

    mu1 = u[0 * G:1 * G]
    mu2 = u[1 * G:2 * G]
    e11 = u[2 * G:3 * G]
    e22 = u[3 * G:4 * G]
    e12 = u[4 * G:5 * G]

    mu1_sq = mu1 * mu1
    mu2_sq = mu2 * mu2
    mu1_mu2 = mu1 * mu2
    sigma1_sq = e11 - mu1_sq
    sigma2_sq = e22 - mu2_sq
    sigma12 = e12 - mu1_mu2

    C1 = 0.01 ** 2   # same constants as the PyTorch reference
    C2 = 0.03 ** 2
    num = (2.0 * mu1_mu2 + C1) * (2.0 * sigma12 + C2)
    den = (mu1_sq + mu2_sq + C1) * (sigma1_sq + sigma2_sq + C2)

    # EUP approximate reciprocal + one Newton step -> ~f32-accurate divide
    # without spending VALU slots on a full-precision division sequence.
    r = pl.reciprocal(den, approx=True)
    r = r * (2.0 - den * r)
    ssim_map = num * r

    diff = x1 - x2

    # Per-chunk partial sums (no shared accumulator -> grid can be "parallel").
    # keepdims reductions give (1,1,1) blocks directly (no rank-0 stores).
    ssim_out_ref[...] = jnp.sum(ssim_map, keepdims=True)
    sq_out_ref[...] = jnp.sum(diff * diff, keepdims=True)


def _pick_chunk(n_images: int, H: int, W: int,
                budget_bytes: int = 20 << 20) -> int:
    """Largest divisor of n_images whose per-step VMEM estimate fits budget."""
    per_img = 108 * H * W + 20 * H * H + 1024   # rough fp32 live-bytes estimate
    max_g = max(1, budget_bytes // per_img)
    g = 1
    for d in range(1, n_images + 1):
        if n_images % d == 0 and d <= max_g:
            g = d
    return g


def combined_loss(output, target, *, alpha=1.0, beta=0.1,
                  window_size=11, sigma=1.5):
    """alpha * MSE(output, target) + beta * (1 - SSIM(output, target))."""
    assert output.shape == target.shape
    B, C, H, W = output.shape
    N = B * C

    x1 = output.astype(jnp.float32).reshape(N, H, W)
    x2 = target.astype(jnp.float32).reshape(N, H, W)

    g1d = _gaussian_1d(window_size, sigma)
    a_h = jnp.asarray(_band_matrix(H, g1d))   # (H, H)
    a_w = jnp.asarray(_band_matrix(W, g1d))   # (W, W)

    G = _pick_chunk(N, H, W)
    num_chunks = N // G

    kernel = functools.partial(_combined_loss_kernel, G=G, H=H, W=W)

    partial_shape = jax.ShapeDtypeStruct((num_chunks, 1, 1), jnp.float32)
    img_spec = pl.BlockSpec((G, H, W), lambda i: (i, 0, 0))
    part_spec = pl.BlockSpec((1, 1, 1), lambda i: (i, 0, 0))

    ssim_partials, sq_partials = pl.pallas_call(
        kernel,
        out_shape=(partial_shape, partial_shape),
        grid_spec=pltpu.PrefetchScalarGridSpec(
            num_scalar_prefetch=0,
            grid=(num_chunks,),
            in_specs=[
                pl.BlockSpec((H, H), lambda i: (0, 0)),   # banded H matrix
                pl.BlockSpec((W, W), lambda i: (0, 0)),   # banded W matrix
                img_spec,                                  # x1 chunk
                img_spec,                                  # x2 chunk
            ],
            out_specs=[part_spec, part_spec],
        ),
        compiler_params=pltpu.CompilerParams(
            dimension_semantics=("parallel",),
            vmem_limit_bytes=48 << 20),
    )(a_h, a_w, x1, x2)

    n_elems = float(N * H * W)
    mse = jnp.sum(sq_partials) / n_elems
    ssim_mean = jnp.sum(ssim_partials) / n_elems
    return alpha * mse + beta * (1.0 - ssim_mean)


if __name__ == "__main__":
    # SSIM module fixes channel=3, so inputs are (B, 3, H, W) in [0, 1].
    key = jax.random.PRNGKey(0)
    k1, k2 = jax.random.split(key)
    B, C, H, W = 2, 3, 16, 16
    output = jax.random.uniform(k1, (B, C, H, W), dtype=jnp.float32)
    target = jax.random.uniform(k2, (B, C, H, W), dtype=jnp.float32)

    loss = combined_loss(output, target, alpha=1.0, beta=0.1)
    jax.block_until_ready(loss)
    print("KERNEL_OK")
</pallas_src>

<mosaic_0001>
module attributes {stable_mosaic.version = 11 : i64} {
  func.func @_combined_loss_kernel(%arg0: i32, %arg1: memref<16x16xf32, #tpu.memory_space<vmem>>, %arg2: memref<16x16xf32, #tpu.memory_space<vmem>>, %arg3: memref<6x16x16xf32, #tpu.memory_space<vmem>>, %arg4: memref<6x16x16xf32, #tpu.memory_space<vmem>>, %arg5: memref<1x1x1xf32, #tpu.memory_space<vmem>>, %arg6: memref<1x1x1xf32, #tpu.memory_space<vmem>>) attributes {dimension_semantics = [#tpu.dimension_semantics<parallel>], iteration_bounds = array<i64: 1>, scalar_prefetch = 0 : i64, scratch_operands = 0 : i64, tpu.core_type = #tpu.core_type<tc>, window_params = [{pipeline_mode = #tpu.pipeline_mode<synchronous>, transform_indices = @transform_0, window_bounds = array<i64: 16, 16>}, {pipeline_mode = #tpu.pipeline_mode<synchronous>, transform_indices = @transform_1, window_bounds = array<i64: 16, 16>}, {transform_indices = @transform_2, window_bounds = array<i64: 6, 16, 16>}, {transform_indices = @transform_3, window_bounds = array<i64: 6, 16, 16>}, {transform_indices = @transform_4, window_bounds = array<i64: 1, 1, 1>}, {transform_indices = @transform_5, window_bounds = array<i64: 1, 1, 1>}]} {
    %c0 = arith.constant 0 : index
    %c0_0 = arith.constant 0 : index
    %c0_1 = arith.constant 0 : index
    %0 = vector.load %arg3[%c0, %c0_0, %c0_1] : memref<6x16x16xf32, #tpu.memory_space<vmem>>, vector<6x16x16xf32>
    %c0_2 = arith.constant 0 : index
    %c0_3 = arith.constant 0 : index
    %c0_4 = arith.constant 0 : index
    %1 = vector.load %arg4[%c0_2, %c0_3, %c0_4] : memref<6x16x16xf32, #tpu.memory_space<vmem>>, vector<6x16x16xf32>
    %2 = arith.mulf %0, %0 : vector<6x16x16xf32>
    %3 = arith.mulf %1, %1 : vector<6x16x16xf32>
    %4 = arith.mulf %0, %1 : vector<6x16x16xf32>
    %5 = tpu.concatenate %0, %1, %2, %3, %4 in 0 : vector<6x16x16xf32>, vector<6x16x16xf32>, vector<6x16x16xf32>, vector<6x16x16xf32>, vector<6x16x16xf32> -> vector<30x16x16xf32>
    %6 = vector.shape_cast %5 : vector<30x16x16xf32> to vector<480x16xf32>
    %c0_5 = arith.constant 0 : index
    %c0_6 = arith.constant 0 : index
    %7 = vector.load %arg2[%c0_5, %c0_6] : memref<16x16xf32, #tpu.memory_space<vmem>>, vector<16x16xf32>
    %cst = arith.constant dense<0.000000e+00> : vector<480x16xf32>
    %8 = tpu.matmul %6, %7, %cst {dimension_numbers = #tpu.dot_dimension_numbers<[1], [0], [0], [1], [0, 0, 1, 1], [], []>} : vector<480x16xf32>, vector<16x16xf32>, vector<480x16xf32> -> vector<480x16xf32>
    %9 = vector.shape_cast %8 : vector<480x16xf32> to vector<30x16x16xf32>
    %c0_7 = arith.constant 0 : index
    %c0_8 = arith.constant 0 : index
    %10 = vector.load %arg1[%c0_7, %c0_8] : memref<16x16xf32, #tpu.memory_space<vmem>>, vector<16x16xf32>
    %11 = vector.shape_cast %10 : vector<16x16xf32> to vector<1x16x16xf32>
    %12 = vector.broadcast %11 : vector<1x16x16xf32> to vector<30x16x16xf32>
    "tpu.trace_start"() <{level = 10 : i32, message = "bik,bkw->biw"}> : () -> ()
    %cst_9 = arith.constant dense<0.000000e+00> : vector<30x16x16xf32>
    %13 = tpu.matmul %12, %9, %cst_9 {dimension_numbers = #tpu.dot_dimension_numbers<[2], [1], [1], [2], [0, 0, 0, 1, 1, 2], [0], [0]>} : vector<30x16x16xf32>, vector<30x16x16xf32>, vector<30x16x16xf32> -> vector<30x16x16xf32>
    "tpu.trace_stop"() : () -> ()
    %14 = vector.extract_strided_slice %13 {offsets = [0, 0, 0], sizes = [6, 16, 16], strides = [1, 1, 1]} : vector<30x16x16xf32> to vector<6x16x16xf32>
    %15 = vector.extract_strided_slice %13 {offsets = [6, 0, 0], sizes = [6, 16, 16], strides = [1, 1, 1]} : vector<30x16x16xf32> to vector<6x16x16xf32>
    %16 = vector.extract_strided_slice %13 {offsets = [12, 0, 0], sizes = [6, 16, 16], strides = [1, 1, 1]} : vector<30x16x16xf32> to vector<6x16x16xf32>
    %17 = vector.extract_strided_slice %13 {offsets = [18, 0, 0], sizes = [6, 16, 16], strides = [1, 1, 1]} : vector<30x16x16xf32> to vector<6x16x16xf32>
    %18 = vector.extract_strided_slice %13 {offsets = [24, 0, 0], sizes = [6, 16, 16], strides = [1, 1, 1]} : vector<30x16x16xf32> to vector<6x16x16xf32>
    %19 = arith.mulf %14, %14 : vector<6x16x16xf32>
    %20 = arith.mulf %15, %15 : vector<6x16x16xf32>
    %21 = arith.mulf %14, %15 : vector<6x16x16xf32>
    %22 = arith.subf %16, %19 : vector<6x16x16xf32>
    %23 = arith.subf %17, %20 : vector<6x16x16xf32>
    %24 = arith.subf %18, %21 : vector<6x16x16xf32>
    %cst_10 = arith.constant 2.000000e+00 : f32
    %25 = vector.broadcast %cst_10 : f32 to vector<6x16x16xf32>
    %26 = arith.mulf %25, %21 : vector<6x16x16xf32>
    %cst_11 = arith.constant 9.99999974E-5 : f32
    %27 = vector.broadcast %cst_11 : f32 to vector<6x16x16xf32>
    %28 = arith.addf %26, %27 : vector<6x16x16xf32>
    %cst_12 = arith.constant 2.000000e+00 : f32
    %29 = vector.broadcast %cst_12 : f32 to vector<6x16x16xf32>
    %30 = arith.mulf %29, %24 : vector<6x16x16xf32>
    %cst_13 = arith.constant 8.99999984E-4 : f32
    %31 = vector.broadcast %cst_13 : f32 to vector<6x16x16xf32>
    %32 = arith.addf %30, %31 : vector<6x16x16xf32>
    %33 = arith.mulf %28, %32 : vector<6x16x16xf32>
    %34 = arith.addf %19, %20 : vector<6x16x16xf32>
    %cst_14 = arith.constant 9.99999974E-5 : f32
    %35 = vector.broadcast %cst_14 : f32 to vector<6x16x16xf32>
    %36 = arith.addf %34, %35 : vector<6x16x16xf32>
    %37 = arith.addf %22, %23 : vector<6x16x16xf32>
    %cst_15 = arith.constant 8.99999984E-4 : f32
    %38 = vector.broadcast %cst_15 : f32 to vector<6x16x16xf32>
    %39 = arith.addf %37, %38 : vector<6x16x16xf32>
    %40 = arith.mulf %36, %39 : vector<6x16x16xf32>
    %41 = tpu.reciprocal %40 {approx = true} : vector<6x16x16xf32> -> vector<6x16x16xf32>
    %42 = arith.mulf %40, %41 : vector<6x16x16xf32>
    %cst_16 = arith.constant 2.000000e+00 : f32
    %43 = vector.broadcast %cst_16 : f32 to vector<6x16x16xf32>
    %44 = arith.subf %43, %42 : vector<6x16x16xf32>
    %45 = arith.mulf %41, %44 : vector<6x16x16xf32>
    %46 = arith.mulf %33, %45 : vector<6x16x16xf32>
    %47 = arith.subf %0, %1 : vector<6x16x16xf32>
    %48 = vector.shape_cast %46 : vector<6x16x16xf32> to vector<1x6x16x16xf32>
    %cst_17 = arith.constant dense<0.000000e+00> : vector<1xf32>
    %49 = vector.multi_reduction <add>, %48, %cst_17 [1, 2, 3] : vector<1x6x16x16xf32> to vector<1xf32>
    %50 = vector.shape_cast %49 : vector<1xf32> to vector<1x1x1x1xf32>
    %51 = vector.extract %50[0, 0, 0, 0] : f32 from vector<1x1x1x1xf32>
    %52 = vector.broadcast %51 : f32 to vector<1x1x1xf32>
    %c0_18 = arith.constant 0 : index
    %c0_19 = arith.constant 0 : index
    %c0_20 = arith.constant 0 : index
    %53 = vector.load %arg5[%c0_18, %c0_19, %c0_20] : memref<1x1x1xf32, #tpu.memory_space<vmem>>, vector<1x1x1xf32>
    tpu.vector_store %arg5[%c0_18, %c0_19, %c0_20], %52 {strides = array<i32>} : memref<1x1x1xf32, #tpu.memory_space<vmem>>, vector<1x1x1xf32>,
    %54 = arith.mulf %47, %47 : vector<6x16x16xf32>
    %55 = vector.shape_cast %54 : vector<6x16x16xf32> to vector<1x6x16x16xf32>
    %cst_21 = arith.constant dense<0.000000e+00> : vector<1xf32>
    %56 = vector.multi_reduction <add>, %55, %cst_21 [1, 2, 3] : vector<1x6x16x16xf32> to vector<1xf32>
    %57 = vector.shape_cast %56 : vector<1xf32> to vector<1x1x1x1xf32>
    %58 = vector.extract %57[0, 0, 0, 0] : f32 from vector<1x1x1x1xf32>
    %59 = vector.broadcast %58 : f32 to vector<1x1x1xf32>
    %c0_22 = arith.constant 0 : index
    %c0_23 = arith.constant 0 : index
    %c0_24 = arith.constant 0 : index
    %60 = vector.load %arg6[%c0_22, %c0_23, %c0_24] : memref<1x1x1xf32, #tpu.memory_space<vmem>>, vector<1x1x1xf32>
    tpu.vector_store %arg6[%c0_22, %c0_23, %c0_24], %59 {strides = array<i32>} : memref<1x1x1xf32, #tpu.memory_space<vmem>>, vector<1x1x1xf32>,
    return
  }
  func.func @transform_0(%arg0: i32) -> (i32, i32) {
    %c0_i32 = arith.constant 0 : i32
    %c0_i32_0 = arith.constant 0 : i32
    %c0_i32_1 = arith.constant 0 : i32
    return %c0_i32, %c0_i32_0 : i32, i32
  }
  func.func @transform_1(%arg0: i32) -> (i32, i32) {
    %c0_i32 = arith.constant 0 : i32
    %c0_i32_0 = arith.constant 0 : i32
    %c0_i32_1 = arith.constant 0 : i32
    return %c0_i32, %c0_i32_0 : i32, i32
  }
  func.func @transform_2(%arg0: i32) -> (i32, i32, i32) {
    %c0_i32 = arith.constant 0 : i32
    %c0_i32_0 = arith.constant 0 : i32
    %c0_i32_1 = arith.constant 0 : i32
    return %arg0, %c0_i32, %c0_i32_0 : i32, i32, i32
  }
  func.func @transform_3(%arg0: i32) -> (i32, i32, i32) {
    %c0_i32 = arith.constant 0 : i32
    %c0_i32_0 = arith.constant 0 : i32
    %c0_i32_1 = arith.constant 0 : i32
    return %arg0, %c0_i32, %c0_i32_0 : i32, i32, i32
  }
  func.func @transform_4(%arg0: i32) -> (i32, i32, i32) {
    %c0_i32 = arith.constant 0 : i32
    %c0_i32_0 = arith.constant 0 : i32
    %c0_i32_1 = arith.constant 0 : i32
    return %arg0, %c0_i32, %c0_i32_0 : i32, i32, i32
  }
  func.func @transform_5(%arg0: i32) -> (i32, i32, i32) {
    %c0_i32 = arith.constant 0 : i32
    %c0_i32_0 = arith.constant 0 : i32
    %c0_i32_1 = arith.constant 0 : i32
    return %arg0, %c0_i32, %c0_i32_0 : i32, i32, i32
  }
}

</mosaic_0001>

<bundles_post_ra>
// kernel: tpu_custom_call.1
= control target key start
LH: loop header
LB: loop body
LE: loop exit
PB: predicated region body
PF: predicated region fallthrough
CT: control target
= control target key end

     0   :  { %11 = vsyncpa [#allocation3], 0  ;;  %s5078_s0 = inlined_call_operand.hbm [shape: f32[16,16], index: 0, kind: input, shape index: {}]   ;;  %s5079_s1 = inlined_call_operand.hbm [shape: f32[16,16], index: 1, kind: input, shape index: {}]   ;;  %s5080_s2 = inlined_call_operand.hbm [shape: f32[6,16,16], index: 2, kind: input, shape index: {}]   ;;  %s5081_s3 = inlined_call_operand.hbm [shape: f32[6,16,16], index: 3, kind: input, shape index: {}]   ;;  %s5082_s4 = inlined_call_operand.hbm [shape: f32[1,1,1], index: 4, kind: output, shape index: {0}]   ;;  %s5083_s5 = inlined_call_operand.hbm [shape: f32[1,1,1], index: 5, kind: output, shape index: {1}]  }
   0x1   :  { %12 = vsyncpa [#allocation6], 0 }
   0x2   :  { %13 = vsyncpa [#allocation9], 0 }
   0x3   :  { %14 = vsyncpa [#allocation4], 0 }
   0x4   :  { %15 = vsyncpa [#allocation12], 0  ;;  %s4230_s18 = smov [#allocation5]   ;;  %s4231_s20 = smov [#allocation2]  }
   0x5   :  { %s33_s19 = sshll.u32 %s4230_s18, 4  ;;  %s21_s21 = sshll.u32 %s4231_s20, 4  ;;  %s34_s19 = int_to_ptr.vmem [resolvable:$true] %s33_s19  ;;  %s4268_s21 = int_to_ptr.vmem [resolvable:$true] %s21_s21 }
   0x6   :  { %s4088_s24 = scalar_lea.hbm %s5079_s1, 256 }
   0x7   :  { %p4089_p0 = scmp.ne.s32.totalorder %s5079_s1, %s4088_s24  ;;  %p4092_p1 = scmp.lt.u32.totalorder %s4088_s24, %s5079_s1 }
   0x9   :  { %p4094_p2 = pnand %p4092_p1, %p4089_p0 }
   0xb   :  { %4097 = shalt.err (!%p4094_p2)
}
   0xc   :  { %s4098_s29 = scalar_lea.vmem %s34_s19, 256  ;;  %p4103_p4 = scmp.lt.s32.totalorder %s34_s19, %s34_s19 }
   0xd   :  { %p4099_p3 = scmp.ne.s32.totalorder %s34_s19, %s4098_s29  ;;  %p4104_p5 = scmp.lt.s32.totalorder %s4098_s29, %s4098_s29 }
   0xf   :  { %p4105_p6 = por %p4104_p5, %p4103_p4 }
  0x11   :  { %p4106_p7 = pnand %p4105_p6, %p4099_p3 }
  0x13   :  { %4109 = shalt.err (!%p4106_p7)
}
  0x14   :  { %s4232_s30 = smov 128   ;;  %s4233_s6 = smov 8  }
  0x15   :  { %39 = dma.hbm_to_vmem [thread:$0]  %s5079_s1, 256, %s34_s19, [#allocation6], %s4232_s30, %s4232_s30, %s4233_s6  }
  0x16   :  { %s4110_s11 = scalar_lea.hbm %s5078_s0, 256 }
  0x17   :  { %p4111_p8 = scmp.ne.s32.totalorder %s5078_s0, %s4110_s11  ;;  %p4114_p9 = scmp.lt.u32.totalorder %s4110_s11, %s5078_s0 }
  0x19   :  { %p4116_p10 = pnand %p4114_p9, %p4111_p8 }
  0x1b   :  { %4119 = shalt.err (!%p4116_p10)
}
  0x1c   :  { %s4120_s16 = scalar_lea.vmem %s4268_s21, 256  ;;  %p4125_p12 = scmp.lt.s32.totalorder %s4268_s21, %s4268_s21 }
  0x1d   :  { %p4121_p11 = scmp.ne.s32.totalorder %s4268_s21, %s4120_s16  ;;  %p4126_p13 = scmp.lt.s32.totalorder %s4120_s16, %s4120_s16 }
  0x1f   :  { %p4127_p0 = por %p4126_p13, %p4125_p12 }
  0x21   :  { %p4128_p1 = pnand %p4127_p0, %p4121_p11 }
  0x23   :  { %4131 = shalt.err (!%p4128_p1)
}
  0x24   :  { %27 = dma.hbm_to_vmem [thread:$0]  %s5078_s0, 256, %s4268_s21, [#allocation3], %s4232_s30, %s4232_s30, %s4233_s6  }
  0x25   :  { %s4234_s18 = smov [#allocation7]   ;;  %s4235_s20 = smov [#allocation8]  }
  0x26   :  { %s45_s19 = sshll.u32 %s4234_s18, 4  ;;  %s57_s22 = sshll.u32 %s4235_s20, 4  ;;  %s46_s19 = int_to_ptr.vmem [resolvable:$true] %s45_s19  ;;  %s4305_s22 = int_to_ptr.vmem [resolvable:$true] %s57_s22 }
  0x27   :  { %s4132_s25 = scalar_lea.hbm %s5080_s2, 1536 }
  0x28   :  { %p4133_p2 = scmp.ne.s32.totalorder %s5080_s2, %s4132_s25  ;;  %p4136_p3 = scmp.lt.u32.totalorder %s4132_s25, %s5080_s2 }
  0x2a   :  { %p4138_p4 = pnand %p4136_p3, %p4133_p2 }
  0x2c   :  { %4141 = shalt.err (!%p4138_p4)
}
  0x2d   :  { %s4142_s0 = scalar_lea.vmem %s46_s19, 1536  ;;  %p4147_p6 = scmp.lt.s32.totalorder %s46_s19, %s46_s19 }
  0x2e   :  { %p4143_p5 = scmp.ne.s32.totalorder %s46_s19, %s4142_s0  ;;  %p4148_p7 = scmp.lt.s32.totalorder %s4142_s0, %s4142_s0 }
  0x30   :  { %p4149_p8 = por %p4148_p7, %p4147_p6 }
  0x32   :  { %p4150_p9 = pnand %p4149_p8, %p4143_p5 }
  0x34   :  { %4153 = shalt.err (!%p4150_p9)
}
  0x35   :  { %51 = dma.hbm_to_vmem [thread:$0]  %s5080_s2, 1536, %s46_s19, [#allocation6], %s4232_s30, %s4232_s30, %s4233_s6  }
  0x36   :  { %s4154_s10 = scalar_lea.hbm %s5081_s3, 1536 }
  0x37   :  { %p4155_p10 = scmp.ne.s32.totalorder %s5081_s3, %s4154_s10  ;;  %p4158_p11 = scmp.lt.u32.totalorder %s4154_s10, %s5081_s3 }
  0x39   :  { %p4160_p12 = pnand %p4158_p11, %p4155_p10 }
  0x3b   :  { %4163 = shalt.err (!%p4160_p12)
}
  0x3c   :  { %s4164_s15 = scalar_lea.vmem %s4305_s22, 1536  ;;  %p4169_p0 = scmp.lt.s32.totalorder %s4305_s22, %s4305_s22 }
  0x3d   :  { %p4165_p13 = scmp.ne.s32.totalorder %s4305_s22, %s4164_s15  ;;  %p4170_p1 = scmp.lt.s32.totalorder %s4164_s15, %s4164_s15 }
  0x3f   :  { %p4171_p2 = por %p4170_p1, %p4169_p0 }
  0x41   :  { %p4172_p3 = pnand %p4171_p2, %p4165_p13 }
  0x43   :  { %4175 = shalt.err (!%p4172_p3)
}
  0x44   :  { %63 = dma.hbm_to_vmem [thread:$0]  %s5081_s3, 1536, %s4305_s22, [#allocation9], %s4232_s30, %s4232_s30, %s4233_s6  }
  0x45   :  { %4220 = dma.done.wait [#allocation3], 256  }
  0x46   :  { %4221 = vsyncadd [#allocation3], 4294967040 }
  0x47   :  { %4222 = dma.done.wait [#allocation6], 1792  }
  0x48   :  { %4223 = vsyncadd [#allocation6], 4294965504 }
  0x49   :  { %4224 = dma.done.wait [#allocation9], 1536  }
  0x4a   :  { %4225 = vsyncadd [#allocation9], 4294965760  ;;  %vm138_vm0 = vcmask 130048   ;;  %v136_v0 = vld [vmem:[#allocation5] sm:$0xff]  ;;  %v137_v1 = vld [vmem:[#allocation5 + $0x8] sm:$0xff]  ;;  %s4236_s3 = smov [#allocation10]  }
  0x4b   :  { %v4342_v2 = vld [vmem:[#allocation7] sm:$0xff]  ;;  %v3924_v3 = vpack.c.bf16 %v137_v1, %v136_v0  ;;  %v4346_v4 = vld [vmem:[#allocation7 + $0x8] sm:$0xff]  ;;  %v4348_v5 = vld [vmem:[#allocation7 + $0x10] sm:$0xff]  ;;  %s3293_s30 = sshll.u32 %s4236_s3, 4  ;;  %vm3239_vm1 = vcmask 0   ;;  %s4237_s1 = smov [#allocation11]   ;;  %s3294_s30 = int_to_ptr.vmem [resolvable:$true] %s3293_s30 }
  0x4c   :  { %3624 = vmatprep.mubr.msk.f32.mxu0 %vm138_vm0, %v4342_v2  ;;  %v4350_v6 = vld [vmem:[#allocation7 + $0x18] sm:$0xff]  ;;  %v4352_v7 = vld [vmem:[#allocation7 + $0x20] sm:$0xff]  ;;  %v4354_v8 = vld [vmem:[#allocation7 + $0x28] sm:$0xff]  ;;  %s3303_s17 = sshll.u32 %s4237_s1, 4  ;;  %s4176_s18 = scalar_lea.vmem %s3294_s30, 16  ;;  %s3304_s17 = int_to_ptr.vmem [resolvable:$true] %s3303_s17 }
  0x4d   :  { %3925 = vmatprep.subr.bf16.mxu0 %v3924_v3  ;;  %v4356_v9 = vld [vmem:[#allocation7 + $0x30] sm:$0xff]  ;;  %v4358_v10 = vld [vmem:[#allocation8] sm:$0xff]  ;;  %v4362_v12 = vld [vmem:[#allocation8 + $0x8] sm:$0xff]  ;;  %p4177_p4 = scmp.ne.s32.totalorder %s3294_s30, %s4176_s18  ;;  %s4180_s19 = scalar_lea.vmem %s3294_s30, 32 }
  0x4e   :  { %3927 = vmatpush3.bf16.msra.mxu0 %v3924_v3  ;;  %v3194_v11 = vsub.f32 %v4342_v2, %v4358_v10  ;;  %v4364_v13 = vld [vmem:[#allocation8 + $0x10] sm:$0xff]  ;;  %v4366_v14 = vld [vmem:[#allocation8 + $0x18] sm:$0xff]  ;;  %v3195_v15 = vsub.f32 %v4346_v4, %v4362_v12  ;;  %v4374_v18 = vld [vmem:[#allocation8 + $0x20] sm:$0xff]  ;;  %v4431_v50 = vmul.f32 %v4358_v10, %v4342_v2  ;;  %v4435_v51 = vmul.f32 %v4362_v12, %v4346_v4  ;;  %p4181_p5 = scmp.lt.s32.totalorder %s3294_s30, %s3294_s30  ;;  %p4182_p6 = scmp.lt.s32.totalorder %s4180_s19, %s4176_s18 }
  0x4f   :  { %v3196_v16 = vsub.f32 %v4348_v5, %v4364_v13  ;;  %v3197_v17 = vsub.f32 %v4350_v6, %v4366_v14  ;;  %v4376_v19 = vld [vmem:[#allocation8 + $0x28] sm:$0xff]  ;;  %v4378_v20 = vld [vmem:[#allocation8 + $0x30] sm:$0xff]  ;;  %v4382_v21 = vld [vmem:[#allocation7 + $0x38] sm:$0xff]  ;;  %v3198_v23 = vsub.f32 %v4352_v7, %v4374_v18  ;;  %v4439_v52 = vmul.f32 %v4364_v13, %v4348_v5 }
  0x50   :  { %v3241_v22 = vmul.f32 %v3194_v11, %v3194_v11  ;;  %v3199_v24 = vsub.f32 %v4354_v8, %v4376_v19  ;;  %v3200_v25 = vsub.f32 %v4356_v9, %v4378_v20  ;;  %v4390_v26 = vld [vmem:[#allocation8 + $0x38] sm:$0xff]  ;;  %v3242_v27 = vmul.f32 %v3195_v15, %v3195_v15  ;;  %v4399_v32 = vld [vmem:[#allocation7 + $0x40] sm:$0xff]  ;;  %v4405_v36 = vld [vmem:[#allocation7 + $0x48] sm:$0xff]  ;;  %p4183_p7 = por %p4182_p6, %p4181_p5 }
  0x51   :  { %3625 = vmatmul.mubr.msk.f32.vlgmr.msra.gmra.mrb[0].mxu0 %vm138_vm0, %v4346_v4  ;;  %v3243_v28 = vmul.f32 %v3196_v16, %v3196_v16  ;;  %v3244_v29 = vmul.f32 %v3197_v17, %v3197_v17  ;;  %v4396_v30 = vsub.f32 %v4382_v21, %v4390_v26  ;;  %v3245_v35 = vmul.f32 %v3198_v23, %v3198_v23  ;;  %v4407_v39 = vld [vmem:[#allocation8 + $0x40] sm:$0xff]  ;;  %v4409_v40 = vld [vmem:[#allocation8 + $0x48] sm:$0xff]  ;;  %v4473_v62 = vld [vmem:[#allocation7 + $0x50] sm:$0xff] }
  0x52   :  { %3627 = vmatprep.mubr.msk.f32.mxu0 %vm138_vm0, %v4348_v5  ;;  %v3253_v31 = vsel %vm138_vm0, %v3241_v22, 0.0  ;;  %v3254_v33 = vsel %vm138_vm0, %v3242_v27, 0.0  ;;  %v3246_v38 = vmul.f32 %v3199_v24, %v3199_v24  ;;  %v3247_v42 = vmul.f32 %v3200_v25, %v3200_v25  ;;  %v4481_v0 = vld [vmem:[#allocation7 + $0x58] sm:$0xff]  ;;  %v4503_v1 = vld [vmem:[#allocation8 + $0x50] sm:$0xff]  ;;  %v4584_v27 = vld [vmem:[#allocation2] sm:$0xff]  ;;  %p4184_p8 = pnand %p4183_p7, %p4177_p4 }
  0x53   :  { %v3256_v34 = vsel %vm138_vm0, %v3243_v28, 0.0  ;;  %v3255_v37 = vadd.f32 %v3254_v33, %v3253_v31  ;;  %v3258_v41 = vsel %vm138_vm0, %v3244_v29, 0.0  ;;  %v4416_v43 = vsub.f32 %v4399_v32, %v4407_v39  ;;  %v4509_v3 = vld [vmem:[#allocation8 + $0x58] sm:$0xff]  ;;  %3718 = vmatprep.mubr.msk.f32.mxu1 %vm138_vm0, %v4584_v27 }
  0x54   :  { %v4420_v44 = vsub.f32 %v4405_v36, %v4409_v40  ;;  %v3260_v46 = vsel %vm138_vm0, %v3245_v35, 0.0  ;;  %v3262_v48 = vsel %vm138_vm0, %v3246_v38, 0.0  ;;  %v3264_v49 = vsel %vm138_vm0, %v3247_v42, 0.0 }
  0x55   :  { %3628 = vmatmul.mubr.msk.f32.gmra.mrb[2].mxu0 %vm138_vm0, %v4350_v6  ;;  %v3257_v45 = vadd.f32 %v3256_v34, %v3255_v37  ;;  %v4443_v54 = vmul.f32 %v4366_v14, %v4350_v6  ;;  %v4447_v55 = vmul.f32 %v4374_v18, %v4352_v7  ;;  %v4451_v56 = vmul.f32 %v4376_v19, %v4354_v8 }
  0x56   :  { %3630 = vmatprep.mubr.msk.f32.mxu0 %vm138_vm0, %v4352_v7  ;;  %v4455_v57 = vmul.f32 %v4378_v20, %v4356_v9  ;;  %v4459_v58 = vmul.f32 %v4390_v26, %v4382_v21  ;;  %v4463_v59 = vmul.f32 %v4407_v39, %v4399_v32  ;;  %v4467_v60 = vmul.f32 %v4409_v40, %v4405_v36 }
  0x57   :  { %v3259_v47 = vadd.f32 %v3258_v41, %v3257_v45  ;;  %v100_v11 = vmul.f32 %v4342_v2, %v4342_v2  ;;  %v101_v15 = vmul.f32 %v4346_v4, %v4346_v4  ;;  %v102_v16 = vmul.f32 %v4348_v5, %v4348_v5 }
  0x58   :  { %v103_v17 = vmul.f32 %v4350_v6, %v4350_v6  ;;  %v104_v2 = vmul.f32 %v4352_v7, %v4352_v7  ;;  %v105_v4 = vmul.f32 %v4354_v8, %v4354_v8  ;;  %v106_v5 = vmul.f32 %v4356_v9, %v4356_v9 }
  0x59   :  { %3631 = vmatmul.mubr.msk.f32.gmra.mrb[4].mxu0 %vm138_vm0, %v4354_v8  ;;  %v3261_v53 = vadd.f32 %v3260_v46, %v3259_v47  ;;  %v107_v6 = vmul.f32 %v4382_v21, %v4382_v21  ;;  %v108_v7 = vmul.f32 %v4399_v32, %v4399_v32  ;;  %v109_v8 = vmul.f32 %v4405_v36, %v4405_v36 }
  0x5a   :  { %3633 = vmatprep.mubr.msk.f32.mxu0 %vm138_vm0, %v4356_v9  ;;  %v110_v9 = vmul.f32 %v4473_v62, %v4473_v62  ;;  %v112_v22 = vmul.f32 %v4358_v10, %v4358_v10  ;;  %v113_v23 = vmul.f32 %v4362_v12, %v4362_v12  ;;  %v114_v24 = vmul.f32 %v4364_v13, %v4364_v13 }
  0x5b   :  { %v3263_v61 = vadd.f32 %v3262_v48, %v3261_v53  ;;  %v115_v25 = vmul.f32 %v4366_v14, %v4366_v14  ;;  %v134_v28 = vmul.f32 %v4503_v1, %v4473_v62  ;;  %v135_v29 = vmul.f32 %v4509_v3, %v4481_v0 }
  0x5d   :  { %3634 = vmatmul.mubr.msk.f32.gmra.mrb[6].mxu0 %vm138_vm0, %v4382_v21  ;;  %v4475_v63 = vadd.f32 %v3264_v49, %v3263_v61  ;;  %v111_v21 = vmul.f32 %v4481_v0, %v4481_v0 }
  0x5e   :  { %3636 = vmatprep.mubr.msk.f32.mxu0 %vm138_vm0, %v4399_v32 }
  0x61   :  { %3637 = vmatmul.mubr.msk.f32.gmra.mrb[8].mxu0 %vm138_vm0, %v4405_v36  ;;  %v4615_v36 = vld [vmem:[#allocation2 + $0x8] sm:$0xff] }
  0x62   :  { %3639 = vmatprep.mubr.msk.f32.mxu0 %vm138_vm0, %v4473_v62 }
  0x65   :  { %3640 = vmatmul.mubr.msk.f32.gmra.mrb[10].mxu0 %vm138_vm0, %v4481_v0 }
  0x66   :  { %3642 = vmatprep.mubr.msk.f32.mxu0 %vm138_vm0, %v4358_v10  ;;  %v116_v10 = vmul.f32 %v4374_v18, %v4374_v18 }
  0x69   :  { %3643 = vmatmul.mubr.msk.f32.gmra.mrb[12].mxu0 %vm138_vm0, %v4362_v12  ;;  %v117_v12 = vmul.f32 %v4376_v19, %v4376_v19 }
  0x6a   :  { %3645 = vmatprep.mubr.msk.f32.mxu0 %vm138_vm0, %v4364_v13  ;;  %v118_v13 = vmul.f32 %v4378_v20, %v4378_v20 }
  0x6d   :  { %3646 = vmatmul.mubr.msk.f32.gmra.mrb[14].mxu0 %vm138_vm0, %v4366_v14  ;;  %v119_v14 = vmul.f32 %v4390_v26, %v4390_v26 }
  0x6e   :  { %3648 = vmatprep.mubr.msk.f32.mxu0 %vm138_vm0, %v4374_v18  ;;  %v120_v18 = vmul.f32 %v4407_v39, %v4407_v39 }
  0x71   :  { %3649 = vmatmul.mubr.msk.f32.gmra.mrb[16].mxu0 %vm138_vm0, %v4376_v19  ;;  %v121_v19 = vmul.f32 %v4409_v40, %v4409_v40 }
  0x72   :  { %3651 = vmatprep.mubr.msk.f32.mxu0 %vm138_vm0, %v4378_v20  ;;  %v122_v20 = vmul.f32 %v4503_v1, %v4503_v1 }
  0x75   :  { %3652 = vmatmul.mubr.msk.f32.gmra.mrb[18].mxu0 %vm138_vm0, %v4390_v26  ;;  %v123_v26 = vmul.f32 %v4509_v3, %v4509_v3 }
  0x76   :  { %3654 = vmatprep.mubr.msk.f32.mxu0 %vm138_vm0, %v4407_v39 }
  0x79   :  { %3655 = vmatmul.mubr.msk.f32.gmra.mrb[20].mxu0 %vm138_vm0, %v4409_v40 }
  0x7a   :  { %3657 = vmatprep.mubr.msk.f32.mxu0 %vm138_vm0, %v4503_v1 }
  0x7d   :  { %3658 = vmatmul.mubr.msk.f32.gmra.mrb[22].mxu0 %vm138_vm0, %v4509_v3 }
  0x7e   :  { %3660 = vmatprep.mubr.msk.f32.mxu0 %vm138_vm0, %v100_v11 }
  0x81   :  { %3661 = vmatmul.mubr.msk.f32.gmra.mrb[24].mxu0 %vm138_vm0, %v101_v15 }
  0x82   :  { %3663 = vmatprep.mubr.msk.f32.mxu0 %vm138_vm0, %v102_v16 }
  0x85   :  { %3664 = vmatmul.mubr.msk.f32.gmra.mrb[26].mxu0 %vm138_vm0, %v103_v17 }
  0x86   :  { %3666 = vmatprep.mubr.msk.f32.mxu0 %vm138_vm0, %v104_v2 }
  0x89   :  { %3667 = vmatmul.mubr.msk.f32.gmra.mrb[28].mxu0 %vm138_vm0, %v105_v4 }
  0x8a   :  { %3669 = vmatprep.mubr.msk.f32.mxu0 %vm138_vm0, %v106_v5 }
  0x8d   :  { %3670 = vmatmul.mubr.msk.f32.gmra.mrb[30].mxu0 %vm138_vm0, %v107_v6 }
  0x8e   :  { %3672 = vmatprep.mubr.msk.f32.mxu0 %vm138_vm0, %v108_v7 }
  0x91   :  { %3673 = vmatmul.mubr.msk.f32.gmra.mrb[32].mxu0 %vm138_vm0, %v109_v8 }
  0x92   :  { %3675 = vmatprep.mubr.msk.f32.mxu0 %vm138_vm0, %v110_v9 }
  0x95   :  { %3676 = vmatmul.mubr.msk.f32.gmra.mrb[34].mxu0 %vm138_vm0, %v111_v21 }
  0x96   :  { %3678 = vmatprep.mubr.msk.f32.mxu0 %vm138_vm0, %v112_v22 }
  0x99   :  { %3679 = vmatmul.mubr.msk.f32.gmra.mrb[36].mxu0 %vm138_vm0, %v113_v23 }
  0x9a   :  { %3681 = vmatprep.mubr.msk.f32.mxu0 %vm138_vm0, %v114_v24 }
  0x9d   :  { %3682 = vmatmul.mubr.msk.f32.gmra.mrb[38].mxu0 %vm138_vm0, %v115_v25 }
  0x9e   :  { %3684 = vmatprep.mubr.msk.f32.mxu0 %vm138_vm0, %v116_v10 }
  0xa1   :  { %3685 = vmatmul.mubr.msk.f32.gmra.mrb[40].mxu0 %vm138_vm0, %v117_v12 }
  0xa2   :  { %3687 = vmatprep.mubr.msk.f32.mxu0 %vm138_vm0, %v118_v13 }
  0xa5   :  { %3688 = vmatmul.mubr.msk.f32.gmra.mrb[42].mxu0 %vm138_vm0, %v119_v14 }
  0xa6   :  { %3690 = vmatprep.mubr.msk.f32.mxu0 %vm138_vm0, %v120_v18 }
  0xa9   :  { %3691 = vmatmul.mubr.msk.f32.gmra.mrb[44].mxu0 %vm138_vm0, %v121_v19 }
  0xaa   :  { %3693 = vmatprep.mubr.msk.f32.mxu0 %vm138_vm0, %v122_v20 }
  0xad   :  { %3694 = vmatmul.mubr.msk.f32.gmra.mrb[46].mxu0 %vm138_vm0, %v123_v26 }
  0xae   :  { %3696 = vmatprep.mubr.msk.f32.mxu0 %vm138_vm0, %v4431_v50 }
  0xb1   :  { %3697 = vmatmul.mubr.msk.f32.gmra.mrb[48].mxu0 %vm138_vm0, %v4435_v51 }
  0xb2   :  { %3699 = vmatprep.mubr.msk.f32.mxu0 %vm138_vm0, %v4439_v52 }
  0xb5   :  { %3700 = vmatmul.mubr.msk.f32.gmra.mrb[50].mxu0 %vm138_vm0, %v4443_v54 }
  0xb6   :  { %3702 = vmatprep.mubr.msk.f32.mxu0 %vm138_vm0, %v4447_v55 }
  0xb9   :  { %3703 = vmatmul.mubr.msk.f32.gmra.mrb[52].mxu0 %vm138_vm0, %v4451_v56 }
  0xba   :  { %3705 = vmatprep.mubr.msk.f32.mxu0 %vm138_vm0, %v4455_v57 }
  0xbd   :  { %3706 = vmatmul.mubr.msk.f32.gmra.mrb[54].mxu0 %vm138_vm0, %v4459_v58 }
  0xbe   :  { %3708 = vmatprep.mubr.msk.f32.mxu0 %vm138_vm0, %v4463_v59 }
  0xc1   :  { %3709 = vmatmul.mubr.msk.f32.gmra.mrb[56].mxu0 %vm138_vm0, %v4467_v60 }
  0xc2   :  { %3711 = vmatprep.mubr.msk.f32.mxu0 %vm138_vm0, %v134_v28 }
  0xc5   :  { %3712 = vmatmul.mubr.msk.f32.gmra.mrb[58].mxu0 %vm138_vm0, %v135_v29 }
 0x124   :  { %v3626_v31 = vpop.f32.mrb[0].mxu0 }
 0x125   :  { %v385_v32 = vpop.f32.mrb[1].mxu0 }
 0x126   :  { %v3928_v33 = vpack.c.bf16 %v3626_v31, %v385_v32 }
 0x128   :  { %v3629_v34 = vpop.f32.mrb[2].mxu0  ;;  %3929 = vmatprep.subr.bf16.mxu1 %v3928_v33 }
 0x129   :  { %v395_v35 = vpop.f32.mrb[3].mxu0  ;;  %3931 = vmatpush3.bf16.msra.mxu1 %v3928_v33 }
 0x12a   :  { %v3932_v37 = vpack.c.bf16 %v3629_v34, %v395_v35 }
 0x12c   :  { %v3632_v38 = vpop.f32.mrb[4].mxu0  ;;  %3719 = vmatmul.mubr.msk.f32.vlgmr.msra.gmra.mrb[0].mxu1 %vm138_vm0, %v4615_v36  ;;  %3933 = vmatprep.subr.bf16.mxu1 %v3932_v37 }
 0x12d   :  { %v405_v39 = vpop.f32.mrb[5].mxu0  ;;  %3935 = vmatpush3.bf16.msra.mxu1 %v3932_v37  ;;  %3725 = vmatprep.mubr.msk.f32.mxu1 %vm138_vm0, %v4584_v27 }
 0x12e   :  { %v3936_v40 = vpack.c.bf16 %v3632_v38, %v405_v39 }
 0x130   :  { %v3635_v41 = vpop.f32.mrb[6].mxu0  ;;  %3726 = vmatmul.mubr.msk.f32.vlgmr.msra.gmra.mrb[2].mxu1 %vm138_vm0, %v4615_v36  ;;  %3937 = vmatprep.subr.bf16.mxu1 %v3936_v40 }
 0x131   :  { %v415_v42 = vpop.f32.mrb[7].mxu0  ;;  %3939 = vmatpush3.bf16.msra.mxu1 %v3936_v40  ;;  %3732 = vmatprep.mubr.msk.f32.mxu1 %vm138_vm0, %v4584_v27 }
 0x132   :  { %v3940_v45 = vpack.c.bf16 %v3635_v41, %v415_v42 }
 0x134   :  { %v3638_v46 = vpop.f32.mrb[8].mxu0  ;;  %3733 = vmatmul.mubr.msk.f32.vlgmr.msra.gmra.mrb[4].mxu1 %vm138_vm0, %v4615_v36  ;;  %3941 = vmatprep.subr.bf16.mxu1 %v3940_v45 }
 0x135   :  { %v425_v47 = vpop.f32.mrb[9].mxu0  ;;  %3943 = vmatpush3.bf16.msra.mxu1 %v3940_v45  ;;  %3739 = vmatprep.mubr.msk.f32.mxu1 %vm138_vm0, %v4584_v27 }
 0x136   :  { %v3944_v48 = vpack.c.bf16 %v3638_v46, %v425_v47 }
 0x138   :  { %v3641_v49 = vpop.f32.mrb[10].mxu0  ;;  %3740 = vmatmul.mubr.msk.f32.vlgmr.msra.gmra.mrb[6].mxu1 %vm138_vm0, %v4615_v36  ;;  %3945 = vmatprep.subr.bf16.mxu1 %v3944_v48 }
 0x139   :  { %v435_v50 = vpop.f32.mrb[11].mxu0  ;;  %3947 = vmatpush3.bf16.msra.mxu1 %v3944_v48  ;;  %3746 = vmatprep.mubr.msk.f32.mxu1 %vm138_vm0, %v4584_v27 }
 0x13a   :  { %v3948_v51 = vpack.c.bf16 %v3641_v49, %v435_v50 }
 0x13c   :  { %v3644_v52 = vpop.f32.mrb[12].mxu0  ;;  %3747 = vmatmul.mubr.msk.f32.vlgmr.msra.gmra.mrb[8].mxu1 %vm138_vm0, %v4615_v36  ;;  %3949 = vmatprep.subr.bf16.mxu1 %v3948_v51 }
 0x13d   :  { %v445_v53 = vpop.f32.mrb[13].mxu0  ;;  %3951 = vmatpush3.bf16.msra.mxu1 %v3948_v51  ;;  %3753 = vmatprep.mubr.msk.f32.mxu1 %vm138_vm0, %v4584_v27 }
 0x13e   :  { %v3952_v54 = vpack.c.bf16 %v3644_v52, %v445_v53 }
 0x140   :  { %v3647_v55 = vpop.f32.mrb[14].mxu0  ;;  %3754 = vmatmul.mubr.msk.f32.vlgmr.msra.gmra.mrb[10].mxu1 %vm138_vm0, %v4615_v36  ;;  %3953 = vmatprep.subr.bf16.mxu1 %v3952_v54 }
 0x141   :  { %v455_v56 = vpop.f32.mrb[15].mxu0  ;;  %3955 = vmatpush3.bf16.msra.mxu1 %v3952_v54  ;;  %3760 = vmatprep.mubr.msk.f32.mxu1 %vm138_vm0, %v4584_v27 }
 0x142   :  { %v3956_v57 = vpack.c.bf16 %v3647_v55, %v455_v56 }
 0x144   :  { %v3650_v58 = vpop.f32.mrb[16].mxu0  ;;  %3761 = vmatmul.mubr.msk.f32.vlgmr.msra.gmra.mrb[12].mxu1 %vm138_vm0, %v4615_v36  ;;  %3957 = vmatprep.subr.bf16.mxu1 %v3956_v57 }
 0x145   :  { %v465_v59 = vpop.f32.mrb[17].mxu0  ;;  %3959 = vmatpush3.bf16.msra.mxu1 %v3956_v57  ;;  %3767 = vmatprep.mubr.msk.f32.mxu1 %vm138_vm0, %v4584_v27 }
 0x146   :  { %v3960_v60 = vpack.c.bf16 %v3650_v58, %v465_v59 }
 0x148   :  { %v3653_v61 = vpop.f32.mrb[18].mxu0  ;;  %3768 = vmatmul.mubr.msk.f32.vlgmr.msra.gmra.mrb[14].mxu1 %vm138_vm0, %v4615_v36  ;;  %3961 = vmatprep.subr.bf16.mxu1 %v3960_v60 }
 0x149   :  { %v475_v62 = vpop.f32.mrb[19].mxu0  ;;  %3963 = vmatpush3.bf16.msra.mxu1 %v3960_v60  ;;  %3774 = vmatprep.mubr.msk.f32.mxu1 %vm138_vm0, %v4584_v27 }
 0x14a   :  { %v3964_v0 = vpack.c.bf16 %v3653_v61, %v475_v62 }
 0x14c   :  { %v3656_v1 = vpop.f32.mrb[20].mxu0  ;;  %3775 = vmatmul.mubr.msk.f32.vlgmr.msra.gmra.mrb[16].mxu1 %vm138_vm0, %v4615_v36  ;;  %3965 = vmatprep.subr.bf16.mxu1 %v3964_v0 }
 0x14d   :  { %v485_v3 = vpop.f32.mrb[21].mxu0  ;;  %3967 = vmatpush3.bf16.msra.mxu1 %v3964_v0  ;;  %3781 = vmatprep.mubr.msk.f32.mxu1 %vm138_vm0, %v4584_v27 }
 0x14e   :  { %v3968_v11 = vpack.c.bf16 %v3656_v1, %v485_v3 }
 0x150   :  { %v3659_v15 = vpop.f32.mrb[22].mxu0  ;;  %3782 = vmatmul.mubr.msk.f32.vlgmr.msra.gmra.mrb[18].mxu1 %vm138_vm0, %v4615_v36  ;;  %3969 = vmatprep.subr.bf16.mxu1 %v3968_v11 }
 0x151   :  { %v495_v16 = vpop.f32.mrb[23].mxu0  ;;  %3971 = vmatpush3.bf16.msra.mxu1 %v3968_v11  ;;  %3788 = vmatprep.mubr.msk.f32.mxu1 %vm138_vm0, %v4584_v27  ;;  %v3248_v11 = vmul.f32 %v4396_v30, %v4396_v30 }
 0x152   :  { %v3972_v17 = vpack.c.bf16 %v3659_v15, %v495_v16 }
 0x153   :  { %v3266_v16 = vsel %vm138_vm0, %v3248_v11, 0.0 }
 0x154   :  { %v3662_v2 = vpop.f32.mrb[24].mxu0  ;;  %3789 = vmatmul.mubr.msk.f32.vlgmr.msra.gmra.mrb[20].mxu1 %vm138_vm0, %v4615_v36  ;;  %3973 = vmatprep.subr.bf16.mxu1 %v3972_v17 }
 0x155   :  { %v505_v4 = vpop.f32.mrb[25].mxu0  ;;  %3975 = vmatpush3.bf16.msra.mxu1 %v3972_v17  ;;  %3795 = vmatprep.mubr.msk.f32.mxu1 %vm138_vm0, %v4584_v27  ;;  %v3249_v17 = vmul.f32 %v4416_v43, %v4416_v43 }
 0x156   :  { %v3976_v5 = vpack.c.bf16 %v3662_v2, %v505_v4  ;;  %v3250_v4 = vmul.f32 %v4420_v44, %v4420_v44 }
 0x158   :  { %v3665_v6 = vpop.f32.mrb[26].mxu0  ;;  %3796 = vmatmul.mubr.msk.f32.vlgmr.msra.gmra.mrb[22].mxu1 %vm138_vm0, %v4615_v36  ;;  %3977 = vmatprep.subr.bf16.mxu1 %v3976_v5 }
 0x159   :  { %v515_v7 = vpop.f32.mrb[27].mxu0  ;;  %3979 = vmatpush3.bf16.msra.mxu1 %v3976_v5  ;;  %3802 = vmatprep.mubr.msk.f32.mxu1 %vm138_vm0, %v4584_v27 }
 0x15a   :  { %v3980_v8 = vpack.c.bf16 %v3665_v6, %v515_v7  ;;  %v3267_v6 = vadd.f32 %v3266_v16, %v4475_v63  ;;  %v3268_v7 = vsel %vm138_vm0, %v3249_v17, 0.0 }
 0x15c   :  { %v3668_v9 = vpop.f32.mrb[28].mxu0  ;;  %3803 = vmatmul.mubr.msk.f32.vlgmr.msra.gmra.mrb[24].mxu1 %vm138_vm0, %v4615_v36  ;;  %3981 = vmatprep.subr.bf16.mxu1 %v3980_v8 }
 0x15d   :  { %v525_v21 = vpop.f32.mrb[29].mxu0  ;;  %3983 = vmatpush3.bf16.msra.mxu1 %v3980_v8  ;;  %3809 = vmatprep.mubr.msk.f32.mxu1 %vm138_vm0, %v4584_v27  ;;  %v3270_v8 = vsel %vm138_vm0, %v3250_v4, 0.0 }
 0x15e   :  { %v3984_v22 = vpack.c.bf16 %v3668_v9, %v525_v21 }
 0x160   :  { %v3671_v23 = vpop.f32.mrb[30].mxu0  ;;  %3810 = vmatmul.mubr.msk.f32.vlgmr.msra.gmra.mrb[26].mxu1 %vm138_vm0, %v4615_v36  ;;  %3985 = vmatprep.subr.bf16.mxu1 %v3984_v22 }
 0x161   :  { %v535_v24 = vpop.f32.mrb[31].mxu0  ;;  %3987 = vmatpush3.bf16.msra.mxu1 %v3984_v22  ;;  %3816 = vmatprep.mubr.msk.f32.mxu1 %vm138_vm0, %v4584_v27 }
 0x162   :  { %v3988_v25 = vpack.c.bf16 %v3671_v23, %v535_v24 }
 0x164   :  { %v3674_v10 = vpop.f32.mrb[32].mxu0  ;;  %3817 = vmatmul.mubr.msk.f32.vlgmr.msra.gmra.mrb[28].mxu1 %vm138_vm0, %v4615_v36  ;;  %3989 = vmatprep.subr.bf16.mxu1 %v3988_v25 }
 0x165   :  { %v545_v12 = vpop.f32.mrb[33].mxu0  ;;  %3991 = vmatpush3.bf16.msra.mxu1 %v3988_v25  ;;  %3823 = vmatprep.mubr.msk.f32.mxu1 %vm138_vm0, %v4584_v27 }
 0x166   :  { %v3992_v13 = vpack.c.bf16 %v3674_v10, %v545_v12 }
 0x168   :  { %v3677_v14 = vpop.f32.mrb[34].mxu0  ;;  %3824 = vmatmul.mubr.msk.f32.vlgmr.msra.gmra.mrb[30].mxu1 %vm138_vm0, %v4615_v36  ;;  %3993 = vmatprep.subr.bf16.mxu1 %v3992_v13 }
 0x169   :  { %v555_v18 = vpop.f32.mrb[35].mxu0  ;;  %3995 = vmatpush3.bf16.msra.mxu1 %v3992_v13  ;;  %3830 = vmatprep.mubr.msk.f32.mxu1 %vm138_vm0, %v4584_v27 }
 0x16a   :  { %v3996_v19 = vpack.c.bf16 %v3677_v14, %v555_v18 }
 0x16c   :  { %v3680_v20 = vpop.f32.mrb[36].mxu0  ;;  %3831 = vmatmul.mubr.msk.f32.vlgmr.msra.gmra.mrb[32].mxu1 %vm138_vm0, %v4615_v36  ;;  %3997 = vmatprep.subr.bf16.mxu1 %v3996_v19 }
 0x16d   :  { %v565_v26 = vpop.f32.mrb[37].mxu0  ;;  %3999 = vmatpush3.bf16.msra.mxu1 %v3996_v19  ;;  %3837 = vmatprep.mubr.msk.f32.mxu1 %vm138_vm0, %v4584_v27 }
 0x16e   :  { %v4000_v28 = vpack.c.bf16 %v3680_v20, %v565_v26 }
 0x170   :  { %v3683_v29 = vpop.f32.mrb[38].mxu0  ;;  %3838 = vmatmul.mubr.msk.f32.vlgmr.msra.gmra.mrb[34].mxu1 %vm138_vm0, %v4615_v36  ;;  %4001 = vmatprep.subr.bf16.mxu1 %v4000_v28 }
 0x171   :  { %v575_v31 = vpop.f32.mrb[39].mxu0  ;;  %4003 = vmatpush3.bf16.msra.mxu1 %v4000_v28  ;;  %3844 = vmatprep.mubr.msk.f32.mxu1 %vm138_vm0, %v4584_v27 }
 0x172   :  { %v4004_v32 = vpack.c.bf16 %v3683_v29, %v575_v31 }
 0x174   :  { %v3686_v33 = vpop.f32.mrb[40].mxu0  ;;  %3845 = vmatmul.mubr.msk.f32.vlgmr.msra.gmra.mrb[36].mxu1 %vm138_vm0, %v4615_v36  ;;  %4005 = vmatprep.subr.bf16.mxu1 %v4004_v32 }
 0x175   :  { %v585_v34 = vpop.f32.mrb[41].mxu0  ;;  %4007 = vmatpush3.bf16.msra.mxu1 %v4004_v32  ;;  %3851 = vmatprep.mubr.msk.f32.mxu1 %vm138_vm0, %v4584_v27 }
 0x176   :  { %v4008_v35 = vpack.c.bf16 %v3686_v33, %v585_v34 }
 0x178   :  { %v3689_v37 = vpop.f32.mrb[42].mxu0  ;;  %3852 = vmatmul.mubr.msk.f32.vlgmr.msra.gmra.mrb[38].mxu1 %vm138_vm0, %v4615_v36  ;;  %4009 = vmatprep.subr.bf16.mxu1 %v4008_v35 }
 0x179   :  { %v595_v38 = vpop.f32.mrb[43].mxu0  ;;  %4011 = vmatpush3.bf16.msra.mxu1 %v4008_v35  ;;  %3858 = vmatprep.mubr.msk.f32.mxu1 %vm138_vm0, %v4584_v27 }
 0x17a   :  { %v4012_v39 = vpack.c.bf16 %v3689_v37, %v595_v38 }
 0x17c   :  { %v3692_v40 = vpop.f32.mrb[44].mxu0  ;;  %3859 = vmatmul.mubr.msk.f32.vlgmr.msra.gmra.mrb[40].mxu1 %vm138_vm0, %v4615_v36  ;;  %4013 = vmatprep.subr.bf16.mxu1 %v4012_v39 }
 0x17d   :  { %v605_v41 = vpop.f32.mrb[45].mxu0  ;;  %4015 = vmatpush3.bf16.msra.mxu1 %v4012_v39  ;;  %3865 = vmatprep.mubr.msk.f32.mxu1 %vm138_vm0, %v4584_v27 }
 0x17e   :  { %v4016_v42 = vpack.c.bf16 %v3692_v40, %v605_v41 }
 0x180   :  { %v3695_v45 = vpop.f32.mrb[46].mxu0  ;;  %3866 = vmatmul.mubr.msk.f32.vlgmr.msra.gmra.mrb[42].mxu1 %vm138_vm0, %v4615_v36  ;;  %4017 = vmatprep.subr.bf16.mxu1 %v4016_v42 }
 0x181   :  { %v615_v46 = vpop.f32.mrb[47].mxu0  ;;  %4019 = vmatpush3.bf16.msra.mxu1 %v4016_v42  ;;  %3872 = vmatprep.mubr.msk.f32.mxu1 %vm138_vm0, %v4584_v27 }
 0x182   :  { %v4020_v47 = vpack.c.bf16 %v3695_v45, %v615_v46 }
 0x184   :  { %v3698_v48 = vpop.f32.mrb[48].mxu0  ;;  %3873 = vmatmul.mubr.msk.f32.vlgmr.msra.gmra.mrb[44].mxu1 %vm138_vm0, %v4615_v36  ;;  %4021 = vmatprep.subr.bf16.mxu1 %v4020_v47 }
 0x185   :  { %v625_v49 = vpop.f32.mrb[49].mxu0  ;;  %4023 = vmatpush3.bf16.msra.mxu1 %v4020_v47  ;;  %3879 = vmatprep.mubr.msk.f32.mxu1 %vm138_vm0, %v4584_v27 }
 0x186   :  { %v4024_v50 = vpack.c.bf16 %v3698_v48, %v625_v49 }
 0x188   :  { %v3701_v51 = vpop.f32.mrb[50].mxu0  ;;  %3880 = vmatmul.mubr.msk.f32.vlgmr.msra.gmra.mrb[46].mxu1 %vm138_vm0, %v4615_v36  ;;  %4025 = vmatprep.subr.bf16.mxu1 %v4024_v50 }
 0x189   :  { %v635_v52 = vpop.f32.mrb[51].mxu0  ;;  %4027 = vmatpush3.bf16.msra.mxu1 %v4024_v50  ;;  %3886 = vmatprep.mubr.msk.f32.mxu1 %vm138_vm0, %v4584_v27 }
 0x18a   :  { %v4028_v53 = vpack.c.bf16 %v3701_v51, %v635_v52 }
 0x18c   :  { %v3704_v54 = vpop.f32.mrb[52].mxu0  ;;  %3887 = vmatmul.mubr.msk.f32.vlgmr.msra.gmra.mrb[48].mxu1 %vm138_vm0, %v4615_v36  ;;  %4029 = vmatprep.subr.bf16.mxu1 %v4028_v53 }
 0x18d   :  { %v645_v55 = vpop.f32.mrb[53].mxu0  ;;  %4031 = vmatpush3.bf16.msra.mxu1 %v4028_v53  ;;  %3893 = vmatprep.mubr.msk.f32.mxu1 %vm138_vm0, %v4584_v27 }
 0x18e   :  { %v4032_v56 = vpack.c.bf16 %v3704_v54, %v645_v55 }
 0x190   :  { %v3707_v57 = vpop.f32.mrb[54].mxu0  ;;  %3894 = vmatmul.mubr.msk.f32.vlgmr.msra.gmra.mrb[50].mxu1 %vm138_vm0, %v4615_v36  ;;  %4033 = vmatprep.subr.bf16.mxu1 %v4032_v56 }
 0x191   :  { %v655_v58 = vpop.f32.mrb[55].mxu0  ;;  %4035 = vmatpush3.bf16.msra.mxu1 %v4032_v56  ;;  %3900 = vmatprep.mubr.msk.f32.mxu1 %vm138_vm0, %v4584_v27 }
 0x192   :  { %v4036_v59 = vpack.c.bf16 %v3707_v57, %v655_v58 }
 0x194   :  { %v3710_v60 = vpop.f32.mrb[56].mxu0  ;;  %3901 = vmatmul.mubr.msk.f32.vlgmr.msra.gmra.mrb[52].mxu1 %vm138_vm0, %v4615_v36  ;;  %4037 = vmatprep.subr.bf16.mxu1 %v4036_v59 }
 0x195   :  { %v665_v61 = vpop.f32.mrb[57].mxu0  ;;  %4039 = vmatpush3.bf16.msra.mxu1 %v4036_v59  ;;  %3907 = vmatprep.mubr.msk.f32.mxu1 %vm138_vm0, %v4584_v27 }
 0x196   :  { %v4040_v62 = vpack.c.bf16 %v3710_v60, %v665_v61 }
 0x198   :  { %v3713_v0 = vpop.f32.mrb[58].mxu0  ;;  %3908 = vmatmul.mubr.msk.f32.vlgmr.msra.gmra.mrb[54].mxu1 %vm138_vm0, %v4615_v36  ;;  %4041 = vmatprep.subr.bf16.mxu1 %v4040_v62 }
 0x199   :  { %v675_v1 = vpop.f32.mrb[59].mxu0  ;;  %4043 = vmatpush3.bf16.msra.mxu1 %v4040_v62  ;;  %3914 = vmatprep.mubr.msk.f32.mxu1 %vm138_vm0, %v4584_v27 }
 0x19a   :  { %v4044_v3 = vpack.c.bf16 %v3713_v0, %v675_v1 }
 0x19c   :  { %3915 = vmatmul.mubr.msk.f32.vlgmr.msra.gmra.mrb[56].mxu1 %vm138_vm0, %v4615_v36  ;;  %4045 = vmatprep.subr.bf16.mxu1 %v4044_v3 }
 0x19d   :  { %4047 = vmatpush3.bf16.msra.mxu1 %v4044_v3  ;;  %3921 = vmatprep.mubr.msk.f32.mxu1 %vm138_vm0, %v4584_v27 }
 0x1a0   :  { %3922 = vmatmul.mubr.msk.f32.vlgmr.msra.gmra.mrb[58].mxu1 %vm138_vm0, %v4615_v36  ;;  %v3269_v36 = vadd.f32 %v3268_v7, %v3267_v6 }
 0x1a2   :  { %v4745_v9 = vadd.f32 %v3270_v8, %v3269_v36 }
 0x1a4   :  { %5091 = vst [vmem:[#allocation18_spill] sm:$0xff] %v4745_v9 }
 0x1ff   :  { %v3720_v15 = vpop.f32.mrb[0].mxu1 }
 0x200   :  { %v758_v2 = vpop.f32.mrb[1].mxu1  ;;  %v4747_v12 = vmul.f32 %v3720_v15, %v3720_v15 }
 0x201   :  { %v4753_v18 = vmul.f32 %v758_v2, %v758_v2 }
 0x203   :  { %v3727_v5 = vpop.f32.mrb[2].mxu1 }
 0x204   :  { %v833_v27 = vpop.f32.mrb[3].mxu1  ;;  %v4767_v31 = vmul.f32 %v3727_v5, %v3727_v5 }
 0x205   :  { %v4773_v35 = vmul.f32 %v833_v27, %v833_v27 }
 0x207   :  { %v3734_v30 = vpop.f32.mrb[4].mxu1 }
 0x208   :  { %v908_v21 = vpop.f32.mrb[5].mxu1  ;;  %v4787_v42 = vmul.f32 %v3734_v30, %v3734_v30 }
 0x209   :  { %v4793_v48 = vmul.f32 %v908_v21, %v908_v21 }
 0x20b   :  { %v3741_v22 = vpop.f32.mrb[6].mxu1 }
 0x20c   :  { %v983_v23 = vpop.f32.mrb[7].mxu1  ;;  %v4807_v54 = vmul.f32 %v3741_v22, %v3741_v22 }
 0x20d   :  { %v4813_v58 = vmul.f32 %v983_v23, %v983_v23 }
 0x20f   :  { %v3748_v43 = vpop.f32.mrb[8].mxu1 }
 0x210   :  { %v1058_v24 = vpop.f32.mrb[9].mxu1  ;;  %v4827_v1 = vmul.f32 %v3748_v43, %v3748_v43 }
 0x211   :  { %v4833_v16 = vmul.f32 %v1058_v24, %v1058_v24 }
 0x213   :  { %v3755_v25 = vpop.f32.mrb[10].mxu1 }
 0x214   :  { %v1133_v10 = vpop.f32.mrb[11].mxu1 }
 0x217   :  { %v3762_v44 = vpop.f32.mrb[12].mxu1 }
 0x218   :  { %v4749_v63 = vmul.f32 %v3762_v44, %v3762_v44  ;;  %v4751_v13 = vmul.f32 %v3762_v44, %v3720_v15  ;;  %v1208_v14 = vpop.f32.mrb[13].mxu1 }
 0x219   :  { %v4755_v19 = vmul.f32 %v1208_v14, %v1208_v14  ;;  %v4757_v20 = vmul.f32 %v1208_v14, %v758_v2 }
 0x21a   :  { %5092 = vst [vmem:[#allocation19_spill] sm:$0xff] %v4751_v13  ;;  %v4761_v26 = vadd.f32 %v4749_v63, %v4747_v12 }
 0x21b   :  { %5093 = vst [vmem:[#allocation20_spill] sm:$0xff] %v4757_v20  ;;  %v4765_v28 = vadd.f32 %v4755_v19, %v4753_v18  ;;  %v3769_v29 = vpop.f32.mrb[14].mxu1 }
 0x21c   :  { %v4769_v32 = vmul.f32 %v3769_v29, %v3769_v29  ;;  %v4771_v33 = vmul.f32 %v3769_v29, %v3727_v5  ;;  %v1283_v34 = vpop.f32.mrb[15].mxu1 }
 0x21d   :  { %v4775_v37 = vmul.f32 %v1283_v34, %v1283_v34  ;;  %v4777_v38 = vmul.f32 %v1283_v34, %v833_v27  ;;  %v4847_v27 = vmul.f32 %v3755_v25, %v3755_v25 }
 0x21e   :  { %5094 = vst [vmem:[#allocation21_spill] sm:$0xff] %v4771_v33  ;;  %v4781_v39 = vadd.f32 %v4769_v32, %v4767_v31 }
 0x21f   :  { %v4785_v40 = vadd.f32 %v4775_v37, %v4773_v35  ;;  %v3776_v41 = vpop.f32.mrb[16].mxu1  ;;  %5095 = vst [vmem:[#allocation22_spill] sm:$0xff] %v4847_v27 }
 0x220   :  { %v4789_v45 = vmul.f32 %v3776_v41, %v3776_v41  ;;  %v4791_v46 = vmul.f32 %v3776_v41, %v3734_v30  ;;  %v1358_v47 = vpop.f32.mrb[17].mxu1  ;;  %v4853_v30 = vmul.f32 %v1133_v10, %v1133_v10 }
 0x221   :  { %v4795_v49 = vmul.f32 %v1358_v47, %v1358_v47  ;;  %v4797_v50 = vmul.f32 %v1358_v47, %v908_v21 }
 0x222   :  { %v4801_v51 = vadd.f32 %v4789_v45, %v4787_v42  ;;  %5096 = vst [vmem:[#allocation23_spill] sm:$0xff] %v4853_v30 }
 0x223   :  { %v4805_v52 = vadd.f32 %v4795_v49, %v4793_v48  ;;  %v3783_v53 = vpop.f32.mrb[18].mxu1 }
 0x224   :  { %v4809_v55 = vmul.f32 %v3783_v53, %v3783_v53  ;;  %v4811_v56 = vmul.f32 %v3783_v53, %v3741_v22  ;;  %v1433_v57 = vpop.f32.mrb[19].mxu1 }
 0x225   :  { %v4815_v59 = vmul.f32 %v1433_v57, %v1433_v57  ;;  %v4817_v60 = vmul.f32 %v1433_v57, %v983_v23 }
 0x226   :  { %v4821_v61 = vadd.f32 %v4809_v55, %v4807_v54 }
 0x227   :  { %v4825_v62 = vadd.f32 %v4815_v59, %v4813_v58  ;;  %v3790_v0 = vpop.f32.mrb[20].mxu1 }
 0x228   :  { %v4829_v3 = vmul.f32 %v3790_v0, %v3790_v0  ;;  %v4831_v11 = vmul.f32 %v3790_v0, %v3748_v43  ;;  %v1508_v15 = vpop.f32.mrb[21].mxu1 }
 0x229   :  { %v4835_v17 = vmul.f32 %v1508_v15, %v1508_v15  ;;  %v4837_v2 = vmul.f32 %v1508_v15, %v1058_v24 }
 0x22a   :  { %v4841_v4 = vadd.f32 %v4829_v3, %v4827_v1 }
 0x22b   :  { %v4845_v5 = vadd.f32 %v4835_v17, %v4833_v16  ;;  %v3797_v6 = vpop.f32.mrb[22].mxu1 }
 0x22c   :  { %v4849_v7 = vmul.f32 %v3797_v6, %v3797_v6  ;;  %v4851_v36 = vmul.f32 %v3797_v6, %v3755_v25  ;;  %v1583_v8 = vpop.f32.mrb[23].mxu1 }
 0x22d   :  { %v4855_v21 = vmul.f32 %v1583_v8, %v1583_v8  ;;  %v4857_v22 = vmul.f32 %v1583_v8, %v1133_v10 }
 0x22e   :  { %v4861_v23 = vadd.f32 %v4849_v7, %v4847_v27 }
 0x22f   :  { %v4865_v43 = vadd.f32 %v4855_v21, %v4853_v30  ;;  %v3804_v24 = vpop.f32.mrb[24].mxu1 }
 0x230   :  { %v2979_v44 = vsub.f32 %v3804_v24, %v4747_v12  ;;  %v1658_v25 = vpop.f32.mrb[25].mxu1  ;;  %v3016_v24 = vmul.f32 2.0, %v4777_v38 }
 0x231   :  { %v2978_v14 = vsub.f32 %v1658_v25, %v4753_v18 }
 0x233   :  { %v3811_v29 = vpop.f32.mrb[26].mxu1 }
 0x234   :  { %v2981_v34 = vsub.f32 %v3811_v29, %v4767_v31  ;;  %v1733_v41 = vpop.f32.mrb[27].mxu1 }
 0x235   :  { %v2980_v10 = vsub.f32 %v1733_v41, %v4773_v35  ;;  %v3015_v41 = vmul.f32 2.0, %v4751_v13  ;;  %v3019_v13 = vmul.f32 2.0, %v4791_v46 }
 0x237   :  { %v3818_v47 = vpop.f32.mrb[28].mxu1  ;;  %v4905_v9 = vadd.f32 0.0001, %v3015_v41 }
 0x238   :  { %v2983_v53 = vsub.f32 %v3818_v47, %v4787_v42  ;;  %v4872_v57 = vpop.f32.mrb[29].mxu1  ;;  %v3014_v47 = vmul.f32 2.0, %v4757_v20 }
 0x239   :  { %v2982_v0 = vsub.f32 %v4872_v57, %v4793_v48  ;;  %v3017_v48 = vmul.f32 2.0, %v4771_v33 }
 0x23a   :  { %v4909_v29 = vadd.f32 0.0001, %v3014_v47 }
 0x23b   :  { %v4876_v15 = vpop.f32.mrb[30].mxu1 }
 0x23c   :  { %v4880_v18 = vpop.f32.mrb[31].mxu1 }
 0x23f   :  { %v4884_v6 = vpop.f32.mrb[32].mxu1 }
 0x240   :  { %v4888_v42 = vpop.f32.mrb[33].mxu1 }
 0x243   :  { %v4892_v8 = vpop.f32.mrb[34].mxu1 }
 0x244   :  { %5097 = vst [vmem:[#allocation24_spill] sm:$0xff] %v4892_v8  ;;  %v4896_v25 = vpop.f32.mrb[35].mxu1  ;;  %v3087_v8 = vadd.f32 0.0001, %v4761_v26  ;;  %v4918_v26 = vadd.f32 0.0001, %v3016_v24 }
 0x245   :  { %5098 = vst [vmem:[#allocation25_spill] sm:$0xff] %v4896_v25  ;;  %v3091_v24 = vadd.f32 0.0001, %v4801_v51 }
 0x247   :  { %v3846_v57 = vpop.f32.mrb[36].mxu1 }
 0x248   :  { %v2991_v35 = vsub.f32 %v3846_v57, %v4749_v63  ;;  %v2108_v31 = vpop.f32.mrb[37].mxu1  ;;  %v3086_v63 = vadd.f32 0.0001, %v4765_v28  ;;  %v4922_v28 = vadd.f32 0.0001, %v3019_v13  ;;  %v3020_v13 = vmul.f32 2.0, %v4817_v60 }
 0x249   :  { %v2990_v12 = vsub.f32 %v2108_v31, %v4755_v19  ;;  %v4914_v19 = vadd.f32 0.0001, %v3017_v48  ;;  %v3089_v31 = vadd.f32 0.0001, %v4781_v39  ;;  %v3021_v48 = vmul.f32 2.0, %v4811_v56 }
 0x24a   :  { %v3099_v27 = vadd.f32 %v2991_v35, %v2979_v44  ;;  %v3018_v35 = vmul.f32 2.0, %v4797_v50 }
 0x24b   :  { %v3098_v20 = vadd.f32 %v2990_v12, %v2978_v14  ;;  %v3853_v30 = vpop.f32.mrb[38].mxu1  ;;  %v3088_v12 = vadd.f32 0.0001, %v4785_v40 }
 0x24c   :  { %v3111_v57 = vadd.f32 0.0009, %v3099_v27  ;;  %v2993_v33 = vsub.f32 %v3853_v30, %v4769_v32  ;;  %v2183_v25 = vpop.f32.mrb[39].mxu1 }
 0x24d   :  { %v3110_v41 = vadd.f32 0.0009, %v3098_v20  ;;  %v2992_v44 = vsub.f32 %v2183_v25, %v4775_v37 }
 0x24e   :  { %v3123_v47 = vmul.f32 %v3111_v57, %v3087_v8  ;;  %v3101_v14 = vadd.f32 %v2993_v33, %v2981_v34  ;;  %v4928_v34 = vadd.f32 0.0001, %v3018_v35  ;;  %v3090_v8 = vadd.f32 0.0001, %v4805_v52 }
 0x24f   :  { %v3122_v27 = vmul.f32 %v3110_v41, %v3086_v63  ;;  %v3100_v32 = vadd.f32 %v2992_v44, %v2980_v10  ;;  %v3860_v30 = vpop.f32.mrb[40].mxu1  ;;  %v3023_v63 = vmul.f32 2.0, %v4831_v11  ;;  %v4933_v44 = vadd.f32 0.0001, %v3021_v48 }
 0x250   :  { %4060 = vrcp.f32 %v3123_v47  ;;  %v3113_v39 = vadd.f32 0.0009, %v3101_v14  ;;  %v2995_v20 = vsub.f32 %v3860_v30, %v4789_v45  ;;  %v2258_v37 = vpop.f32.mrb[41].mxu1  ;;  %v3022_v35 = vmul.f32 2.0, %v4837_v2 }
 0x251   :  { %4062 = vrcp.f32 %v3122_v27  ;;  %v3112_v25 = vadd.f32 0.0009, %v3100_v32  ;;  %v2994_v33 = vsub.f32 %v2258_v37, %v4795_v49  ;;  %v3093_v52 = vadd.f32 0.0001, %v4821_v61 }
 0x252   :  { %v3125_v40 = vmul.f32 %v3113_v39, %v3089_v31  ;;  %v3103_v10 = vadd.f32 %v2995_v20, %v2983_v53  ;;  %v4939_v31 = vadd.f32 0.0001, %v3020_v13  ;;  %v3092_v48 = vadd.f32 0.0001, %v4825_v62 }
 0x253   :  { %v3124_v57 = vmul.f32 %v3112_v25, %v3088_v12  ;;  %v3102_v41 = vadd.f32 %v2994_v33, %v2982_v0  ;;  %v3867_v45 = vpop.f32.mrb[42].mxu1  ;;  %v5099_v0 = vsub.f32 %v4876_v15, %v4807_v54  ;;  %v4945_v39 = vadd.f32 0.0001, %v3023_v63 }
 0x254   :  { %4064 = vrcp.f32 %v3125_v40  ;;  %v3115_v51 = vadd.f32 0.0009, %v3103_v10  ;;  %v2997_v14 = vsub.f32 %v3867_v45, %v4809_v55  ;;  %v2333_v49 = vpop.f32.mrb[43].mxu1  ;;  %v5100_v20 = vsub.f32 %v4880_v18, %v4813_v58 }
 0x255   :  { %4066 = vrcp.f32 %v3124_v57  ;;  %v3114_v32 = vadd.f32 0.0009, %v3102_v41  ;;  %v2996_v53 = vsub.f32 %v2333_v49, %v4815_v59  ;;  %v3095_v61 = vadd.f32 0.0001, %v4841_v4 }
 0x256   :  { %v3127_v12 = vmul.f32 %v3115_v51, %v3091_v24  ;;  %v3105_v30 = vadd.f32 %v2997_v14, %v5099_v0  ;;  %v4954_v54 = vadd.f32 0.0001, %v3022_v35  ;;  %v3094_v10 = vadd.f32 0.0001, %v4845_v5  ;;  %v5104_v0 = vld [vmem:[#allocation22_spill] sm:$0xff] }
 0x257   :  { %v4947_v55 = vmul.f32 %v3114_v32, %v3090_v8  ;;  %v3104_v37 = vadd.f32 %v2996_v53, %v5100_v20  ;;  %v3874_v59 = vpop.f32.mrb[44].mxu1  ;;  %v4960_v58 = vmul.f32 2.0, %v4851_v36  ;;  %v5101_v4 = vsub.f32 %v4884_v6, %v4827_v1 }
 0x258   :  { %4068 = vrcp.f32 %v3127_v12  ;;  %v3117_v25 = vadd.f32 0.0009, %v3105_v30  ;;  %v2999_v24 = vsub.f32 %v3874_v59, %v4829_v3  ;;  %v2408_v33 = vpop.f32.mrb[45].mxu1  ;;  %v4968_v63 = vmul.f32 2.0, %v4857_v22 }
 0x259   :  { %4070 = vrcp.f32 %v4947_v55  ;;  %v3116_v62 = vadd.f32 0.0009, %v3104_v37  ;;  %v2998_v15 = vsub.f32 %v2408_v33, %v4835_v17  ;;  %v5102_v17 = vsub.f32 %v4888_v42, %v4833_v16 }
 0x25a   :  { %v4061_v13 = vpop.eup %4060  ;;  %v4962_v18 = vmul.f32 %v3117_v25, %v3093_v52  ;;  %v3107_v3 = vadd.f32 %v2999_v24, %v5101_v4  ;;  %v3097_v52 = vadd.f32 0.0001, %v4861_v23  ;;  %v3096_v16 = vadd.f32 0.0001, %v4865_v43  ;;  %v5106_v25 = vld [vmem:[#allocation25_spill] sm:$0xff]  ;;  %v5107_v24 = vld [vmem:[#allocation23_spill] sm:$0xff] }
 0x25b   :  { %v4063_v8 = vpop.eup %4062  ;;  %v3147_v41 = vmul.f32 %v4061_v13, %v3123_v47  ;;  %v4970_v45 = vmul.f32 %v3116_v62, %v3092_v48  ;;  %v3106_v5 = vadd.f32 %v2998_v15, %v5102_v17  ;;  %v3881_v51 = vpop.f32.mrb[46].mxu1  ;;  %v5108_v33 = vsub.f32 %v5106_v25, %v5107_v24  ;;  %v5109_v43 = vld [vmem:[#allocation19_spill] sm:$0xff]  ;;  %v5110_v17 = vld [vmem:[#allocation20_spill] sm:$0xff] }
 0x25c   :  { %v3146_v14 = vmul.f32 %v4063_v8, %v3122_v27  ;;  %4072 = vrcp.f32 %v4962_v18  ;;  %v3119_v49 = vadd.f32 0.0009, %v3107_v3  ;;  %v3001_v35 = vsub.f32 %v3881_v51, %v4849_v7  ;;  %v2483_v1 = vpop.f32.mrb[47].mxu1  ;;  %v5103_v27 = vld [vmem:[#allocation24_spill] sm:$0xff] }
 0x25d   :  { %v3159_v6 = vsub.f32 2.0, %v3147_v41  ;;  %4074 = vrcp.f32 %v4970_v45  ;;  %v3118_v32 = vadd.f32 0.0009, %v3106_v5  ;;  %v3000_v47 = vsub.f32 %v2483_v1, %v4855_v21 }
 0x25e   :  { %v4065_v53 = vpop.eup %4064  ;;  %v4981_v42 = vmul.f32 %v3119_v49, %v3095_v61  ;;  %v5105_v30 = vsub.f32 %v5103_v27, %v5104_v0  ;;  %v3158_v7 = vsub.f32 2.0, %v3146_v14 }
 0x25f   :  { %v4067_v20 = vpop.eup %4066  ;;  %v3149_v37 = vmul.f32 %v4065_v53, %v3125_v40  ;;  %v4986_v59 = vmul.f32 %v3118_v32, %v3094_v10  ;;  %v3108_v21 = vadd.f32 %v3000_v47, %v5108_v33  ;;  %v3888_v62 = vpop.f32.mrb[48].mxu1  ;;  %v3171_v41 = vmul.f32 %v4061_v13, %v3159_v6  ;;  %v5111_v6 = vld [vmem:[#allocation21_spill] sm:$0xff] }
 0x260   :  { %v3109_v48 = vadd.f32 %v3001_v35, %v5105_v30  ;;  %v3148_v15 = vmul.f32 %v4067_v20, %v3124_v57  ;;  %4076 = vrcp.f32 %v4981_v42  ;;  %v3003_v61 = vsub.f32 %v3888_v62, %v5109_v43  ;;  %v2558_v4 = vpop.f32.mrb[49].mxu1 }
 0x261   :  { %4078 = vrcp.f32 %v4986_v59  ;;  %v3120_v3 = vadd.f32 0.0009, %v3108_v21  ;;  %v3002_v40 = vsub.f32 %v2558_v4, %v5110_v17  ;;  %v3161_v5 = vsub.f32 2.0, %v3149_v37 }
 0x262   :  { %v3121_v23 = vadd.f32 0.0009, %v3109_v48  ;;  %v4069_v10 = vpop.eup %4068  ;;  %v3160_v51 = vsub.f32 2.0, %v3148_v15  ;;  %v3039_v49 = vmul.f32 2.0, %v3003_v61  ;;  %v3170_v47 = vmul.f32 %v4063_v8, %v3158_v7 }
 0x263   :  { %v4071_v35 = vpop.eup %4070  ;;  %v3151_v57 = vmul.f32 %v4069_v10, %v3127_v12  ;;  %v4997_v1 = vmul.f32 %v3120_v3, %v3096_v16  ;;  %v3038_v32 = vmul.f32 2.0, %v3002_v40  ;;  %v3895_v27 = vpop.f32.mrb[50].mxu1  ;;  %v3173_v7 = vmul.f32 %v4065_v53, %v3161_v5 }
 0x264   :  { %v4995_v14 = vmul.f32 %v3121_v23, %v3097_v52  ;;  %v3150_v0 = vmul.f32 %v4071_v35, %v4947_v55  ;;  %v3051_v13 = vadd.f32 0.0009, %v3039_v49  ;;  %v3005_v30 = vsub.f32 %v3895_v27, %v5111_v6  ;;  %v2633_v48 = vpop.f32.mrb[51].mxu1 }
 0x265   :  { %v3163_v37 = vsub.f32 2.0, %v3151_v57  ;;  %v3050_v52 = vadd.f32 0.0009, %v3038_v32  ;;  %v3004_v25 = vsub.f32 %v2633_v48, %v4777_v38  ;;  %v3172_v15 = vmul.f32 %v4067_v20, %v3160_v51 }
 0x266   :  { %4080 = vrcp.f32 %v4995_v14  ;;  %v4073_v12 = vpop.eup %4072  ;;  %v3162_v16 = vsub.f32 2.0, %v3150_v0  ;;  %v3063_v24 = vmul.f32 %v3051_v13, %v4905_v9  ;;  %v3041_v8 = vmul.f32 2.0, %v3005_v30 }
 0x267   :  { %4082 = vrcp.f32 %v4997_v1  ;;  %v4075_v33 = vpop.eup %4074  ;;  %v3153_v55 = vmul.f32 %v4073_v12, %v4962_v18  ;;  %v3062_v21 = vmul.f32 %v3050_v52, %v4909_v29  ;;  %v3040_v62 = vmul.f32 2.0, %v3004_v25  ;;  %v3902_v23 = vpop.f32.mrb[52].mxu1 }
 0x268   :  { %v3183_v43 = vmul.f32 %v3171_v41, %v3063_v24  ;;  %v3053_v61 = vadd.f32 0.0009, %v3041_v8  ;;  %v3007_v4 = vsub.f32 %v3902_v23, %v4791_v46  ;;  %v3175_v3 = vmul.f32 %v4069_v10, %v3163_v37  ;;  %v2708_v38 = vpop.f32.mrb[53].mxu1 }
 0x269   :  { %v3152_v17 = vmul.f32 %v4075_v33, %v4970_v45  ;;  %v3182_v40 = vmul.f32 %v3170_v47, %v3062_v21  ;;  %v3052_v9 = vadd.f32 0.0009, %v3040_v62  ;;  %v3006_v53 = vsub.f32 %v2708_v38, %v4797_v50 }
 0x26a   :  { %v4077_v5 = vpop.eup %4076  ;;  %v3165_v49 = vsub.f32 2.0, %v3153_v55  ;;  %v3207_v18 = vsel %vm138_vm0, %v3183_v43, 0.0  ;;  %v3065_v29 = vmul.f32 %v3053_v61, %v4914_v19  ;;  %v3043_v20 = vmul.f32 2.0, %v3007_v4 }
 0x26b   :  { %v5012_v51 = vpop.eup %4078  ;;  %v3155_v41 = vmul.f32 %v4077_v5, %v4981_v42  ;;  %v3206_v46 = vsel %vm138_vm0, %v3182_v40, 0.0  ;;  %v3064_v10 = vmul.f32 %v3052_v9, %v4918_v26  ;;  %v3042_v45 = vmul.f32 2.0, %v3006_v53  ;;  %v3909_v57 = vpop.f32.mrb[54].mxu1 }
 0x26c   :  { %v5019_v50 = vmul.f32 %v5012_v51, %v4986_v59  ;;  %v3208_v32 = vadd.f32 %v3207_v18, %v3206_v46  ;;  %v3185_v47 = vmul.f32 %v3173_v7, %v3065_v29  ;;  %v3055_v27 = vadd.f32 0.0009, %v3043_v20  ;;  %v2783_v0 = vpop.f32.mrb[55].mxu1 }
 0x26d   :  { %v3164_v19 = vsub.f32 2.0, %v3152_v17  ;;  %v3167_v13 = vsub.f32 2.0, %v3155_v41  ;;  %v3184_v6 = vmul.f32 %v3172_v15, %v3064_v10  ;;  %v3054_v30 = vadd.f32 0.0009, %v3042_v45 }
 0x26e   :  { %v3166_v42 = vsub.f32 2.0, %v5019_v50  ;;  %v3067_v37 = vmul.f32 %v3055_v27, %v4922_v28  ;;  %v3174_v26 = vmul.f32 %v4071_v35, %v3162_v16  ;;  %v3009_v52 = vsub.f32 %v3909_v57, %v4811_v56  ;;  %v4085_v27 = vld [vmem:[#allocation8 + $0x50] sm:$0xff] }
 0x26f   :  { %v3211_v24 = vsel %vm138_vm0, %v3185_v47, 0.0  ;;  %v3209_v8 = vsel %vm138_vm0, %v3184_v6, 0.0  ;;  %v3066_v7 = vmul.f32 %v3054_v30, %v4928_v34  ;;  %v3916_v55 = vpop.f32.mrb[56].mxu1  ;;  %v3177_v35 = vmul.f32 %v4073_v12, %v3165_v49  ;;  %v4084_v47 = vld [vmem:[#allocation7 + $0x50] sm:$0xff] }
 0x270   :  { %v4081_v48 = vpop.eup %4080  ;;  %v3210_v62 = vadd.f32 %v3209_v8, %v3208_v32  ;;  %v3187_v15 = vmul.f32 %v3175_v3, %v3067_v37  ;;  %v3045_v23 = vmul.f32 2.0, %v3009_v52  ;;  %v2858_v43 = vpop.f32.mrb[57].mxu1  ;;  %v3008_v56 = vsub.f32 %v2783_v0, %v4817_v60 }
 0x271   :  { %v4083_v25 = vpop.eup %4082  ;;  %v3157_v59 = vmul.f32 %v4081_v48, %v4995_v14  ;;  %v3186_v28 = vmul.f32 %v3174_v26, %v3066_v7  ;;  %v3011_v16 = vsub.f32 %v3916_v55, %v4831_v11  ;;  %v3176_v38 = vmul.f32 %v4075_v33, %v3164_v19 }
 0x272   :  { %v3156_v21 = vmul.f32 %v4083_v25, %v4997_v1  ;;  %v3212_v61 = vadd.f32 %v3211_v24, %v3210_v62  ;;  %v3057_v4 = vadd.f32 0.0009, %v3045_v23  ;;  %v3215_v17 = vsel %vm138_vm0, %v3187_v15, 0.0  ;;  %v4087_v24 = vld [vmem:[#allocation8 + $0x58] sm:$0xff] }
 0x273   :  { %v3213_v34 = vsel %vm138_vm0, %v3186_v28, 0.0  ;;  %v3044_v40 = vmul.f32 2.0, %v3008_v56  ;;  %v3047_v1 = vmul.f32 2.0, %v3011_v16  ;;  %v3923_v9 = vpop.f32.mrb[58].mxu1  ;;  %v3179_v18 = vmul.f32 %v4077_v5, %v3167_v13 }
 0x274   :  { %v3168_v14 = vsub.f32 2.0, %v3156_v21  ;;  %v3214_v3 = vadd.f32 %v3213_v34, %v3212_v61  ;;  %v3069_v53 = vmul.f32 %v3057_v4, %v4933_v44  ;;  %v3010_v12 = vsub.f32 %v2858_v43, %v4837_v2  ;;  %v2933_v60 = vpop.f32.mrb[59].mxu1 }
 0x275   :  { %v3056_v49 = vadd.f32 0.0009, %v3044_v40  ;;  %v3059_v11 = vadd.f32 0.0009, %v3047_v1  ;;  %v3013_v29 = vsub.f32 %v3923_v9, %v4851_v36  ;;  %v3012_v33 = vsub.f32 %v2933_v60, %v4857_v22 }
 0x276   :  { %v3189_v20 = vmul.f32 %v3177_v35, %v3069_v53  ;;  %v3216_v41 = vadd.f32 %v3215_v17, %v3214_v3  ;;  %v3046_v46 = vmul.f32 2.0, %v3010_v12  ;;  %v3169_v10 = vsub.f32 2.0, %v3157_v59  ;;  %v4086_v59 = vld [vmem:[#allocation7 + $0x58] sm:$0xff]  ;;  %v5112_v35 = vld [vmem:[#allocation18_spill] sm:$0xff] }
 0x277   :  { %v3068_v45 = vmul.f32 %v3056_v49, %v4939_v31  ;;  %v3071_v57 = vmul.f32 %v3059_v11, %v4945_v39  ;;  %v3049_v50 = vmul.f32 2.0, %v3013_v29  ;;  %v3048_v44 = vmul.f32 2.0, %v3012_v33 }
 0x278   :  { %v3037_v5 = vadd.f32 0.0001, %v4960_v58  ;;  %v3036_v2 = vadd.f32 0.0001, %v4968_v63  ;;  %v3058_v32 = vadd.f32 0.0009, %v3046_v46  ;;  %v3204_v36 = vsub.f32 %v4084_v47, %v4085_v27 }
 0x279   :  { %v3188_v0 = vmul.f32 %v3176_v38, %v3068_v45  ;;  %v3191_v22 = vmul.f32 %v3179_v18, %v3071_v57  ;;  %v3061_v19 = vadd.f32 0.0009, %v3049_v50  ;;  %v3060_v13 = vadd.f32 0.0009, %v3048_v44 }
 0x27a   :  { %v3070_v6 = vmul.f32 %v3058_v32, %v4954_v54  ;;  %v3178_v31 = vmul.f32 %v5012_v51, %v3166_v42  ;;  %v3180_v30 = vmul.f32 %v4083_v25, %v3168_v14  ;;  %v3181_v58 = vmul.f32 %v4081_v48, %v3169_v10 }
 0x27b   :  { %v3217_v39 = vsel %vm138_vm0, %v3188_v0, 0.0  ;;  %v3073_v37 = vmul.f32 %v3061_v19, %v3037_v5  ;;  %v3072_v26 = vmul.f32 %v3060_v13, %v3036_v2  ;;  %v3205_v8 = vsub.f32 %v4086_v59, %v4087_v24 }
 0x27c   :  { %v3218_v52 = vadd.f32 %v3217_v39, %v3216_v41  ;;  %v3190_v63 = vmul.f32 %v3178_v31, %v3070_v6  ;;  %v3219_v7 = vsel %vm138_vm0, %v3189_v20, 0.0  ;;  %v3251_v62 = vmul.f32 %v3204_v36, %v3204_v36 }
 0x27d   :  { %v3192_v55 = vmul.f32 %v3180_v30, %v3072_v26  ;;  %v3193_v21 = vmul.f32 %v3181_v58, %v3073_v37  ;;  %v3223_v42 = vsel %vm138_vm0, %v3191_v22, 0.0  ;;  %v3252_v23 = vmul.f32 %v3205_v8, %v3205_v8 }
 0x27e   :  { %v3220_v15 = vadd.f32 %v3219_v7, %v3218_v52  ;;  %v3221_v54 = vsel %vm138_vm0, %v3190_v63, 0.0  ;;  %v3272_v48 = vsel %vm138_vm0, %v3251_v62, 0.0 }
 0x27f   :  { %v3225_v25 = vsel %vm138_vm0, %v3192_v55, 0.0  ;;  %v3273_v56 = vadd.f32 %v3272_v48, %v5112_v35  ;;  %v3227_v16 = vsel %vm138_vm0, %v3193_v21, 0.0  ;;  %v3274_v14 = vsel %vm138_vm0, %v3252_v23, 0.0 }
 0x280   :  { %v3222_v51 = vadd.f32 %v3221_v54, %v3220_v15 }
 0x281   :  { %v3275_v4 = vadd.f32 %v3274_v14, %v3273_v56 }
 0x282   :  { %v3224_v43 = vadd.f32 %v3223_v42, %v3222_v51 }
 0x284   :  { %v3226_v28 = vadd.f32 %v3225_v25, %v3224_v43 }
 0x286   :  { %v3228_v61 = vadd.f32 %v3227_v16, %v3226_v28 }
 0x288   :  { %3229 = vadd.xlane.f32.xlu0 %v3228_v61 }
 0x28c   :  { %3276 = vadd.xlane.f32.xlu0 %v3275_v4 }
 0x315   :  { %v3230_v38 = vpop.xlane.xlu0 %3229 }
 0x316   :  { %v3231_v17 = vrot.slane %v3230_v38, 4 }
 0x318   :  { %v3232_v34 = vadd.f32 %v3231_v17, %v3230_v38 }
 0x319   :  { %v3277_v40 = vpop.xlane.xlu0 %3276 }
 0x31a   :  { %v3233_v1 = vrot.slane %v3232_v34, 2  ;;  %v3278_v9 = vrot.slane %v3277_v40, 4 }
 0x31c   :  { %v3279_v3 = vadd.f32 %v3278_v9, %v3277_v40  ;;  %v3234_v53 = vadd.f32 %v3233_v1, %v3232_v34 }
 0x31e   :  { %v3280_v18 = vrot.slane %v3279_v3, 2  ;;  %v3235_v12 = vrot.slane %v3234_v53, 1 }
 0x320   :  { %v3281_v60 = vadd.f32 %v3280_v18, %v3279_v3  ;;  %v3236_v49 = vadd.f32 %v3235_v12, %v3234_v53 }
 0x322   :  { %4048 = vpush %v3236_v49  ;;  %v3282_v11 = vrot.slane %v3281_v60, 1 }
 0x324   :  { %v3283_v29 = vadd.f32 %v3282_v11, %v3281_v60 }
 0x326   :  { %4050 = vpush %v3283_v29 }
 0x353   :  { %s4049_s6 = spop %4048 }
 0x354   :  { %v3238_v33 = vstv %s4049_s6 }
 0x355   :  { %3240 = vst.msk [vmem:[#allocation10] sm:$0x1] %vm3239_vm1, %v3238_v33 }
 0x356   :  { %4187 = shalt.err (!%p4184_p8)
}
 0x357   :  { %s4188_s23 = scalar_lea.hbm %s5082_s4, 16 }
 0x358   :  { %p4189_p9 = scmp.ne.s32.totalorder %s5082_s4, %s4188_s23  ;;  %p4192_p10 = scmp.lt.u32.totalorder %s4188_s23, %s5082_s4 }
 0x35a   :  { %p4194_p11 = pnand %p4192_p10, %p4189_p9 }
 0x35c   :  { %4197 = shalt.err (!%p4194_p11)
}
 0x35d   :  { %3296 = dma.vmem_to_hbm [thread:$0]  %s3294_s30, 16, %s5082_s4, [#allocation4]  }
 0x35e   :  { %s4051_s0 = spop %4050  ;;  %s4198_s21 = scalar_lea.vmem %s3304_s17, 16 }
 0x35f   :  { %v3285_v20 = vstv %s4051_s0  ;;  %p4199_p12 = scmp.ne.s32.totalorder %s3304_s17, %s4198_s21  ;;  %s4202_s7 = scalar_lea.vmem %s3304_s17, 32 }
 0x360   :  { %3286 = vst.msk [vmem:[#allocation11] sm:$0x1] %vm3239_vm1, %v3285_v20  ;;  %p4203_p13 = scmp.lt.s32.totalorder %s3304_s17, %s3304_s17  ;;  %p4204_p0 = scmp.lt.s32.totalorder %s4202_s7, %s4198_s21 }
 0x362   :  { %p4205_p1 = por %p4204_p0, %p4203_p13 }
 0x364   :  { %p4206_p2 = pnand %p4205_p1, %p4199_p12 }
 0x366   :  { %4209 = shalt.err (!%p4206_p2)
}
 0x367   :  { %s4210_s10 = scalar_lea.hbm %s5083_s5, 16 }
 0x368   :  { %p4211_p3 = scmp.ne.s32.totalorder %s5083_s5, %s4210_s10  ;;  %p4214_p4 = scmp.lt.u32.totalorder %s4210_s10, %s5083_s5 }
 0x36a   :  { %p4216_p5 = pnand %p4214_p4, %p4211_p3 }
 0x36c   :  { %4219 = shalt.err (!%p4216_p5)
}
 0x36d   :  { %3306 = dma.vmem_to_hbm [thread:$0]  %s3304_s17, 16, %s5083_s5, [#allocation12]  }
 0x36e   :  { %4226 = dma.done.wait [#allocation4], 16  }
 0x36f   :  { %4227 = vsyncadd [#allocation4], 4294967280 }
 0x370   :  { %4228 = dma.done.wait [#allocation12], 16  }
 0x371   :  { %4229 = vsyncadd [#allocation12], 4294967280 }
 0x372   :  { %3313 = vsyncpa [#allocation3], 1 }
 0x373   :  { %3314 = vsyncpa [#allocation6], 1 }
 0x374   :  { %3315 = vsyncpa [#allocation9], 1 }
 0x375   :  { %3316 = vsyncpa [#allocation4], 1 }
 0x376   :  { %3317 = vsyncpa [#allocation12], 1 }

</bundles_post_ra>
